<compile_context>
chip_gen: v7x
topology: tpu7x:2x2x1
jax: 0.10.0
libtpu: 0.0.40
codegen_flags: <defaults>
</compile_context>

<pallas_src>
import jax
import jax.numpy as jnp
from jax.experimental import pallas as pl
from jax.experimental.pallas import tpu as pltpu

HIDDEN = 128
SEQ = 7
OUT_DIM = 65
OUT_PAD = 128          # lane-padded output width
MAX_TB = 1024          # per-tile batch cap: keeps double-buffered f32 out tile
                       # (SEQ*tb*128*4 B) comfortably inside scoped VMEM on v7x.


def _sigmoid(x):
    # sigmoid(x) = 0.5 * tanh(0.5 * x) + 0.5  -> one EUP push instead of two.
    return 0.5 * jnp.tanh(0.5 * x) + 0.5


def decoder_kernel(x_ref, wih_ref, whh_ref, b_ref, wout_ref, bout_ref,
                   out_ref, hslab_ref):
    H = HIDDEN
    x = x_ref[...]                                   # (tb, 128) bf16
    tb = x.shape[0]

    # Time-invariant input contribution to all gates: one MXU matmul, reused by
    # every step (the LSTM input is the same vector expanded over the 7 steps).
    xg = jnp.dot(x, wih_ref[...],
                 preferred_element_type=jnp.float32) + b_ref[...]   # (tb, 512) f32

    def gate_update(gates, c_prev):
        i = _sigmoid(gates[:, 0 * H:1 * H])
        f = _sigmoid(gates[:, 1 * H:2 * H])
        g = jnp.tanh(gates[:, 2 * H:3 * H])
        o = _sigmoid(gates[:, 3 * H:4 * H])
        c = f * c_prev + i * g
        h = o * jnp.tanh(c)
        return h, c

    # ---- t = 0 (peeled): h0 == 0 so the recurrent matmul is identically zero,
    # and c0 == 0 so the forget gate is irrelevant.
    i0 = _sigmoid(xg[:, 0 * H:1 * H])
    g0 = jnp.tanh(xg[:, 2 * H:3 * H])
    o0 = _sigmoid(xg[:, 3 * H:4 * H])
    c = i0 * g0
    h = o0 * jnp.tanh(c)
    hslab_ref[0:tb, :] = h.astype(jnp.bfloat16)

    # ---- t = 1 .. 6: one small recurrent matmul per step on the critical path.
    # W_hh is read at the point of use (not hoisted) so its 32 vregs are not
    # held live across the unrolled loop; per-step h lands in the bf16 slab.
    for t in range(1, SEQ):
        gates = xg + jnp.dot(h.astype(jnp.bfloat16), whh_ref[...],
                             preferred_element_type=jnp.float32)     # (tb, 512)
        h, c = gate_update(gates, c)
        hslab_ref[t * tb:(t + 1) * tb, :] = h.astype(jnp.bfloat16)

    # ---- Single batched output projection over all 7 hidden states:
    # (SEQ*tb, 128) @ (128, 128).  W_out / b_out loaded only here.
    y = jnp.dot(hslab_ref[...], wout_ref[...],
                preferred_element_type=jnp.float32) + bout_ref[...]  # (SEQ*tb, 128)

    # Fold the (t, b) -> (b, t) reordering into the kernel with 7 dense,
    # 128-lane-aligned stores into the lane-dense (tb, 7*128) output block.
    for t in range(SEQ):
        out_ref[:, t * OUT_PAD:(t + 1) * OUT_PAD] = y[t * tb:(t + 1) * tb, :]


def _choose_num_tiles(batch, requested=None):
    if requested is not None:
        num_tiles = requested
    else:
        try:
            kind = jax.devices()[0].device_kind.lower()
        except Exception:
            kind = ""
        num_tiles = 1
        # v7x has 2 TensorCores/chip, but the 6-step recurrence is serial per
        # core regardless of tb: only split when each core gets >= 128 rows.
        if (("v7" in kind) or ("7x" in kind)) and batch >= 256 and (batch // 2) % 16 == 0:
            num_tiles = 2
    # Cap per-tile batch so the double-buffered f32 output tile stays well
    # inside the scoped-VMEM default on every generation (incl. v7x's 64 MiB).
    while (batch // num_tiles > MAX_TB
           and batch % (num_tiles * 2) == 0
           and (batch // (num_tiles * 2)) % 16 == 0):
        num_tiles *= 2
    # bf16 x tile wants 16-sublane-dense rows; otherwise fall back to a single
    # full-batch tile (block == full dim is always legal).
    if batch % num_tiles != 0 or (batch // num_tiles) % 16 != 0:
        num_tiles = 1
    return num_tiles


def prepare_decoder_params(w_ih, w_hh, b_ih, b_hh, w_out, b_out):
    """One-time weight prep (transpose / pad / cast) hoisted out of the call path."""
    wih_t = jnp.asarray(w_ih).T.astype(jnp.bfloat16)                      # (128, 512)
    whh_t = jnp.asarray(w_hh).T.astype(jnp.bfloat16)                      # (128, 512)
    b_all = (jnp.asarray(b_ih, jnp.float32)
             + jnp.asarray(b_hh, jnp.float32)).reshape(1, 4 * HIDDEN)     # (1, 512)
    wout_t = jnp.zeros((HIDDEN, OUT_PAD), jnp.float32)
    wout_t = wout_t.at[:, :OUT_DIM].set(
        jnp.asarray(w_out, jnp.float32).T).astype(jnp.bfloat16)           # (128, 128)
    bout_p = jnp.zeros((1, OUT_PAD), jnp.float32)
    bout_p = bout_p.at[:, :OUT_DIM].set(jnp.asarray(b_out, jnp.float32))  # (1, 128)
    return wih_t, whh_t, b_all, wout_t, bout_p


def decoder_forward(x, params, *, num_tiles=None):
    """x: (B, 128) -> (B, 7, 65) float32, matching the PyTorch Decoder."""
    wih_t, whh_t, b_all, wout_t, bout_p = params
    B = x.shape[0]
    num_tiles = _choose_num_tiles(B, num_tiles)
    tb = B // num_tiles

    out_flat = pl.pallas_call(
        decoder_kernel,
        out_shape=jax.ShapeDtypeStruct((B, SEQ * OUT_PAD), jnp.float32),
        grid_spec=pltpu.PrefetchScalarGridSpec(
            num_scalar_prefetch=0,
            grid=(num_tiles,),
            in_specs=[
                pl.BlockSpec((tb, HIDDEN), lambda i: (i, 0)),           # x tile
                pl.BlockSpec((HIDDEN, 4 * HIDDEN), lambda i: (0, 0)),   # W_ih^T
                pl.BlockSpec((HIDDEN, 4 * HIDDEN), lambda i: (0, 0)),   # W_hh^T
                pl.BlockSpec((1, 4 * HIDDEN), lambda i: (0, 0)),        # bias
                pl.BlockSpec((HIDDEN, OUT_PAD), lambda i: (0, 0)),      # W_out^T
                pl.BlockSpec((1, OUT_PAD), lambda i: (0, 0)),           # b_out
            ],
            out_specs=pl.BlockSpec((tb, SEQ * OUT_PAD), lambda i: (i, 0)),
            scratch_shapes=[pltpu.VMEM((SEQ * tb, HIDDEN), jnp.bfloat16)],
        ),
        compiler_params=pltpu.CompilerParams(
            dimension_semantics=("parallel",)),
    )(x.astype(jnp.bfloat16), wih_t, whh_t, b_all, wout_t, bout_p)

    # Free (row-major) reshape + final slice to the true 65 output columns.
    return out_flat.reshape(B, SEQ, OUT_PAD)[:, :, :OUT_DIM]


def decoder_reference(x, w_ih, w_hh, b_ih, b_hh, w_out, b_out):
    """Pure-JAX f32 reference matching PyTorch nn.LSTM + nn.Linear semantics."""
    B = x.shape[0]
    h = jnp.zeros((B, HIDDEN), jnp.float32)
    c = jnp.zeros((B, HIDDEN), jnp.float32)
    outs = []
    for _ in range(SEQ):
        gates = x @ w_ih.T + b_ih + h @ w_hh.T + b_hh
        i = jax.nn.sigmoid(gates[:, 0 * HIDDEN:1 * HIDDEN])
        f = jax.nn.sigmoid(gates[:, 1 * HIDDEN:2 * HIDDEN])
        g = jnp.tanh(gates[:, 2 * HIDDEN:3 * HIDDEN])
        o = jax.nn.sigmoid(gates[:, 3 * HIDDEN:4 * HIDDEN])
        c = f * c + i * g
        h = o * jnp.tanh(c)
        outs.append(h @ w_out.T + b_out)
    return jnp.stack(outs, axis=1)  # (B, 7, 65)


if __name__ == "__main__":
    key = jax.random.PRNGKey(0)
    k_x, k1, k2, k3, k4, k5, k6 = jax.random.split(key, 7)

    B = 16
    scale = 1.0 / jnp.sqrt(HIDDEN)

    x = jax.random.normal(k_x, (B, HIDDEN), jnp.float32)
    w_ih = jax.random.uniform(k1, (4 * HIDDEN, HIDDEN), jnp.float32, -scale, scale)
    w_hh = jax.random.uniform(k2, (4 * HIDDEN, HIDDEN), jnp.float32, -scale, scale)
    b_ih = jax.random.uniform(k3, (4 * HIDDEN,), jnp.float32, -scale, scale)
    b_hh = jax.random.uniform(k4, (4 * HIDDEN,), jnp.float32, -scale, scale)
    w_out = jax.random.uniform(k5, (OUT_DIM, HIDDEN), jnp.float32, -scale, scale)
    b_out = jax.random.uniform(k6, (OUT_DIM,), jnp.float32, -scale, scale)

    # One-time weight prep (hoisted out of the per-call path).
    params = jax.block_until_ready(
        prepare_decoder_params(w_ih, w_hh, b_ih, b_hh, w_out, b_out))

    fwd = jax.jit(decoder_forward)
    out = jax.block_until_ready(fwd(x, params))

    ref = decoder_reference(x, w_ih, w_hh, b_ih, b_hh, w_out, b_out)
    assert out.shape == (B, SEQ, OUT_DIM), out.shape
    # bf16 matmul operands (f32 accumulation) -> relaxed tolerance vs f32 reference.
    max_err = float(jnp.max(jnp.abs(out - ref)))
    assert jnp.allclose(out, ref, atol=5e-2, rtol=5e-2), max_err

    print("KERNEL_OK")
</pallas_src>

<mosaic_0001>
module attributes {stable_mosaic.version = 11 : i64} {
  func.func @decoder_kernel(%arg0: i32, %arg1: memref<16x128xbf16, #tpu.memory_space<vmem>>, %arg2: memref<128x512xbf16, #tpu.memory_space<vmem>>, %arg3: memref<128x512xbf16, #tpu.memory_space<vmem>>, %arg4: memref<1x512xf32, #tpu.memory_space<vmem>>, %arg5: memref<128x128xbf16, #tpu.memory_space<vmem>>, %arg6: memref<1x128xf32, #tpu.memory_space<vmem>>, %arg7: memref<16x896xf32, #tpu.memory_space<vmem>>, %arg8: memref<112x128xbf16, #tpu.memory_space<vmem>>) attributes {dimension_semantics = [#tpu.dimension_semantics<parallel>], iteration_bounds = array<i64: 1>, scalar_prefetch = 0 : i64, scratch_operands = 1 : i64, tpu.core_type = #tpu.core_type<tc>, window_params = [{transform_indices = @transform_0, window_bounds = array<i64: 16, 128>}, {pipeline_mode = #tpu.pipeline_mode<synchronous>, transform_indices = @transform_1, window_bounds = array<i64: 128, 512>}, {pipeline_mode = #tpu.pipeline_mode<synchronous>, transform_indices = @transform_2, window_bounds = array<i64: 128, 512>}, {pipeline_mode = #tpu.pipeline_mode<synchronous>, transform_indices = @transform_3, window_bounds = array<i64: 1, 512>}, {pipeline_mode = #tpu.pipeline_mode<synchronous>, transform_indices = @transform_4, window_bounds = array<i64: 128, 128>}, {pipeline_mode = #tpu.pipeline_mode<synchronous>, transform_indices = @transform_5, window_bounds = array<i64: 1, 128>}, {transform_indices = @transform_6, window_bounds = array<i64: 16, 896>}]} {
    %c0 = arith.constant 0 : index
    %c0_0 = arith.constant 0 : index
    %0 = vector.load %arg1[%c0, %c0_0] : memref<16x128xbf16, #tpu.memory_space<vmem>>, vector<16x128xbf16>
    %c0_1 = arith.constant 0 : index
    %c0_2 = arith.constant 0 : index
    %1 = vector.load %arg2[%c0_1, %c0_2] : memref<128x512xbf16, #tpu.memory_space<vmem>>, vector<128x512xbf16>
    %cst = arith.constant dense<0.000000e+00> : vector<16x512xf32>
    %2 = tpu.matmul %0, %1, %cst {dimension_numbers = #tpu.dot_dimension_numbers<[1], [0], [0], [1], [0, 0, 1, 1], [], []>} : vector<16x128xbf16>, vector<128x512xbf16>, vector<16x512xf32> -> vector<16x512xf32>
    %c0_3 = arith.constant 0 : index
    %c0_4 = arith.constant 0 : index
    %3 = vector.load %arg4[%c0_3, %c0_4] : memref<1x512xf32, #tpu.memory_space<vmem>>, vector<1x512xf32>
    %4 = vector.broadcast %3 : vector<1x512xf32> to vector<16x512xf32>
    %5 = arith.addf %2, %4 : vector<16x512xf32>
    %6 = vector.extract_strided_slice %5 {offsets = [0, 0], sizes = [16, 128], strides = [1, 1]} : vector<16x512xf32> to vector<16x128xf32>
    %cst_5 = arith.constant 5.000000e-01 : f32
    %7 = vector.broadcast %cst_5 : f32 to vector<16x128xf32>
    %8 = arith.mulf %7, %6 : vector<16x128xf32>
    %9 = math.tanh %8 : vector<16x128xf32>
    %cst_6 = arith.constant 5.000000e-01 : f32
    %10 = vector.broadcast %cst_6 : f32 to vector<16x128xf32>
    %11 = arith.mulf %10, %9 : vector<16x128xf32>
    %cst_7 = arith.constant 5.000000e-01 : f32
    %12 = vector.broadcast %cst_7 : f32 to vector<16x128xf32>
    %13 = arith.addf %11, %12 : vector<16x128xf32>
    %14 = vector.extract_strided_slice %5 {offsets = [0, 256], sizes = [16, 128], strides = [1, 1]} : vector<16x512xf32> to vector<16x128xf32>
    %15 = math.tanh %14 : vector<16x128xf32>
    %16 = vector.extract_strided_slice %5 {offsets = [0, 384], sizes = [16, 128], strides = [1, 1]} : vector<16x512xf32> to vector<16x128xf32>
    %cst_8 = arith.constant 5.000000e-01 : f32
    %17 = vector.broadcast %cst_8 : f32 to vector<16x128xf32>
    %18 = arith.mulf %17, %16 : vector<16x128xf32>
    %19 = math.tanh %18 : vector<16x128xf32>
    %cst_9 = arith.constant 5.000000e-01 : f32
    %20 = vector.broadcast %cst_9 : f32 to vector<16x128xf32>
    %21 = arith.mulf %20, %19 : vector<16x128xf32>
    %cst_10 = arith.constant 5.000000e-01 : f32
    %22 = vector.broadcast %cst_10 : f32 to vector<16x128xf32>
    %23 = arith.addf %21, %22 : vector<16x128xf32>
    %24 = arith.mulf %13, %15 : vector<16x128xf32>
    %25 = math.tanh %24 : vector<16x128xf32>
    %26 = arith.mulf %23, %25 : vector<16x128xf32>
    %27 = arith.truncf %26 : vector<16x128xf32> to vector<16x128xbf16>
    %c0_11 = arith.constant 0 : index
    %c0_12 = arith.constant 0 : index
    %28 = vector.load %arg8[%c0_11, %c0_12] : memref<112x128xbf16, #tpu.memory_space<vmem>>, vector<16x128xbf16>
    tpu.vector_store %arg8[%c0_11, %c0_12], %27 {strides = array<i32>} : memref<112x128xbf16, #tpu.memory_space<vmem>>, vector<16x128xbf16>,
    %29 = arith.truncf %26 : vector<16x128xf32> to vector<16x128xbf16>
    %c0_13 = arith.constant 0 : index
    %c0_14 = arith.constant 0 : index
    %30 = vector.load %arg3[%c0_13, %c0_14] : memref<128x512xbf16, #tpu.memory_space<vmem>>, vector<128x512xbf16>
    %cst_15 = arith.constant dense<0.000000e+00> : vector<16x512xf32>
    %31 = tpu.matmul %29, %30, %cst_15 {dimension_numbers = #tpu.dot_dimension_numbers<[1], [0], [0], [1], [0, 0, 1, 1], [], []>} : vector<16x128xbf16>, vector<128x512xbf16>, vector<16x512xf32> -> vector<16x512xf32>
    %32 = arith.addf %5, %31 : vector<16x512xf32>
    %33 = vector.extract_strided_slice %32 {offsets = [0, 0], sizes = [16, 128], strides = [1, 1]} : vector<16x512xf32> to vector<16x128xf32>
    %cst_16 = arith.constant 5.000000e-01 : f32
    %34 = vector.broadcast %cst_16 : f32 to vector<16x128xf32>
    %35 = arith.mulf %34, %33 : vector<16x128xf32>
    %36 = math.tanh %35 : vector<16x128xf32>
    %cst_17 = arith.constant 5.000000e-01 : f32
    %37 = vector.broadcast %cst_17 : f32 to vector<16x128xf32>
    %38 = arith.mulf %37, %36 : vector<16x128xf32>
    %cst_18 = arith.constant 5.000000e-01 : f32
    %39 = vector.broadcast %cst_18 : f32 to vector<16x128xf32>
    %40 = arith.addf %38, %39 : vector<16x128xf32>
    %41 = vector.extract_strided_slice %32 {offsets = [0, 128], sizes = [16, 128], strides = [1, 1]} : vector<16x512xf32> to vector<16x128xf32>
    %cst_19 = arith.constant 5.000000e-01 : f32
    %42 = vector.broadcast %cst_19 : f32 to vector<16x128xf32>
    %43 = arith.mulf %42, %41 : vector<16x128xf32>
    %44 = math.tanh %43 : vector<16x128xf32>
    %cst_20 = arith.constant 5.000000e-01 : f32
    %45 = vector.broadcast %cst_20 : f32 to vector<16x128xf32>
    %46 = arith.mulf %45, %44 : vector<16x128xf32>
    %cst_21 = arith.constant 5.000000e-01 : f32
    %47 = vector.broadcast %cst_21 : f32 to vector<16x128xf32>
    %48 = arith.addf %46, %47 : vector<16x128xf32>
    %49 = vector.extract_strided_slice %32 {offsets = [0, 256], sizes = [16, 128], strides = [1, 1]} : vector<16x512xf32> to vector<16x128xf32>
    %50 = math.tanh %49 : vector<16x128xf32>
    %51 = vector.extract_strided_slice %32 {offsets = [0, 384], sizes = [16, 128], strides = [1, 1]} : vector<16x512xf32> to vector<16x128xf32>
    %cst_22 = arith.constant 5.000000e-01 : f32
    %52 = vector.broadcast %cst_22 : f32 to vector<16x128xf32>
    %53 = arith.mulf %52, %51 : vector<16x128xf32>
    %54 = math.tanh %53 : vector<16x128xf32>
    %cst_23 = arith.constant 5.000000e-01 : f32
    %55 = vector.broadcast %cst_23 : f32 to vector<16x128xf32>
    %56 = arith.mulf %55, %54 : vector<16x128xf32>
    %cst_24 = arith.constant 5.000000e-01 : f32
    %57 = vector.broadcast %cst_24 : f32 to vector<16x128xf32>
    %58 = arith.addf %56, %57 : vector<16x128xf32>
    %59 = arith.mulf %48, %24 : vector<16x128xf32>
    %60 = arith.mulf %40, %50 : vector<16x128xf32>
    %61 = arith.addf %59, %60 : vector<16x128xf32>
    %62 = math.tanh %61 : vector<16x128xf32>
    %63 = arith.mulf %58, %62 : vector<16x128xf32>
    %64 = arith.truncf %63 : vector<16x128xf32> to vector<16x128xbf16>
    %c16 = arith.constant 16 : index
    %c0_25 = arith.constant 0 : index
    %65 = vector.load %arg8[%c16, %c0_25] : memref<112x128xbf16, #tpu.memory_space<vmem>>, vector<16x128xbf16>
    tpu.vector_store %arg8[%c16, %c0_25], %64 {strides = array<i32>} : memref<112x128xbf16, #tpu.memory_space<vmem>>, vector<16x128xbf16>,
    %66 = arith.truncf %63 : vector<16x128xf32> to vector<16x128xbf16>
    %c0_26 = arith.constant 0 : index
    %c0_27 = arith.constant 0 : index
    %67 = vector.load %arg3[%c0_26, %c0_27] : memref<128x512xbf16, #tpu.memory_space<vmem>>, vector<128x512xbf16>
    %cst_28 = arith.constant dense<0.000000e+00> : vector<16x512xf32>
    %68 = tpu.matmul %66, %67, %cst_28 {dimension_numbers = #tpu.dot_dimension_numbers<[1], [0], [0], [1], [0, 0, 1, 1], [], []>} : vector<16x128xbf16>, vector<128x512xbf16>, vector<16x512xf32> -> vector<16x512xf32>
    %69 = arith.addf %5, %68 : vector<16x512xf32>
    %70 = vector.extract_strided_slice %69 {offsets = [0, 0], sizes = [16, 128], strides = [1, 1]} : vector<16x512xf32> to vector<16x128xf32>
    %cst_29 = arith.constant 5.000000e-01 : f32
    %71 = vector.broadcast %cst_29 : f32 to vector<16x128xf32>
    %72 = arith.mulf %71, %70 : vector<16x128xf32>
    %73 = math.tanh %72 : vector<16x128xf32>
    %cst_30 = arith.constant 5.000000e-01 : f32
    %74 = vector.broadcast %cst_30 : f32 to vector<16x128xf32>
    %75 = arith.mulf %74, %73 : vector<16x128xf32>
    %cst_31 = arith.constant 5.000000e-01 : f32
    %76 = vector.broadcast %cst_31 : f32 to vector<16x128xf32>
    %77 = arith.addf %75, %76 : vector<16x128xf32>
    %78 = vector.extract_strided_slice %69 {offsets = [0, 128], sizes = [16, 128], strides = [1, 1]} : vector<16x512xf32> to vector<16x128xf32>
    %cst_32 = arith.constant 5.000000e-01 : f32
    %79 = vector.broadcast %cst_32 : f32 to vector<16x128xf32>
    %80 = arith.mulf %79, %78 : vector<16x128xf32>
    %81 = math.tanh %80 : vector<16x128xf32>
    %cst_33 = arith.constant 5.000000e-01 : f32
    %82 = vector.broadcast %cst_33 : f32 to vector<16x128xf32>
    %83 = arith.mulf %82, %81 : vector<16x128xf32>
    %cst_34 = arith.constant 5.000000e-01 : f32
    %84 = vector.broadcast %cst_34 : f32 to vector<16x128xf32>
    %85 = arith.addf %83, %84 : vector<16x128xf32>
    %86 = vector.extract_strided_slice %69 {offsets = [0, 256], sizes = [16, 128], strides = [1, 1]} : vector<16x512xf32> to vector<16x128xf32>
    %87 = math.tanh %86 : vector<16x128xf32>
    %88 = vector.extract_strided_slice %69 {offsets = [0, 384], sizes = [16, 128], strides = [1, 1]} : vector<16x512xf32> to vector<16x128xf32>
    %cst_35 = arith.constant 5.000000e-01 : f32
    %89 = vector.broadcast %cst_35 : f32 to vector<16x128xf32>
    %90 = arith.mulf %89, %88 : vector<16x128xf32>
    %91 = math.tanh %90 : vector<16x128xf32>
    %cst_36 = arith.constant 5.000000e-01 : f32
    %92 = vector.broadcast %cst_36 : f32 to vector<16x128xf32>
    %93 = arith.mulf %92, %91 : vector<16x128xf32>
    %cst_37 = arith.constant 5.000000e-01 : f32
    %94 = vector.broadcast %cst_37 : f32 to vector<16x128xf32>
    %95 = arith.addf %93, %94 : vector<16x128xf32>
    %96 = arith.mulf %85, %61 : vector<16x128xf32>
    %97 = arith.mulf %77, %87 : vector<16x128xf32>
    %98 = arith.addf %96, %97 : vector<16x128xf32>
    %99 = math.tanh %98 : vector<16x128xf32>
    %100 = arith.mulf %95, %99 : vector<16x128xf32>
    %101 = arith.truncf %100 : vector<16x128xf32> to vector<16x128xbf16>
    %c32 = arith.constant 32 : index
    %c0_38 = arith.constant 0 : index
    %102 = vector.load %arg8[%c32, %c0_38] : memref<112x128xbf16, #tpu.memory_space<vmem>>, vector<16x128xbf16>
    tpu.vector_store %arg8[%c32, %c0_38], %101 {strides = array<i32>} : memref<112x128xbf16, #tpu.memory_space<vmem>>, vector<16x128xbf16>,
    %103 = arith.truncf %100 : vector<16x128xf32> to vector<16x128xbf16>
    %c0_39 = arith.constant 0 : index
    %c0_40 = arith.constant 0 : index
    %104 = vector.load %arg3[%c0_39, %c0_40] : memref<128x512xbf16, #tpu.memory_space<vmem>>, vector<128x512xbf16>
    %cst_41 = arith.constant dense<0.000000e+00> : vector<16x512xf32>
    %105 = tpu.matmul %103, %104, %cst_41 {dimension_numbers = #tpu.dot_dimension_numbers<[1], [0], [0], [1], [0, 0, 1, 1], [], []>} : vector<16x128xbf16>, vector<128x512xbf16>, vector<16x512xf32> -> vector<16x512xf32>
    %106 = arith.addf %5, %105 : vector<16x512xf32>
    %107 = vector.extract_strided_slice %106 {offsets = [0, 0], sizes = [16, 128], strides = [1, 1]} : vector<16x512xf32> to vector<16x128xf32>
    %cst_42 = arith.constant 5.000000e-01 : f32
    %108 = vector.broadcast %cst_42 : f32 to vector<16x128xf32>
    %109 = arith.mulf %108, %107 : vector<16x128xf32>
    %110 = math.tanh %109 : vector<16x128xf32>
    %cst_43 = arith.constant 5.000000e-01 : f32
    %111 = vector.broadcast %cst_43 : f32 to vector<16x128xf32>
    %112 = arith.mulf %111, %110 : vector<16x128xf32>
    %cst_44 = arith.constant 5.000000e-01 : f32
    %113 = vector.broadcast %cst_44 : f32 to vector<16x128xf32>
    %114 = arith.addf %112, %113 : vector<16x128xf32>
    %115 = vector.extract_strided_slice %106 {offsets = [0, 128], sizes = [16, 128], strides = [1, 1]} : vector<16x512xf32> to vector<16x128xf32>
    %cst_45 = arith.constant 5.000000e-01 : f32
    %116 = vector.broadcast %cst_45 : f32 to vector<16x128xf32>
    %117 = arith.mulf %116, %115 : vector<16x128xf32>
    %118 = math.tanh %117 : vector<16x128xf32>
    %cst_46 = arith.constant 5.000000e-01 : f32
    %119 = vector.broadcast %cst_46 : f32 to vector<16x128xf32>
    %120 = arith.mulf %119, %118 : vector<16x128xf32>
    %cst_47 = arith.constant 5.000000e-01 : f32
    %121 = vector.broadcast %cst_47 : f32 to vector<16x128xf32>
    %122 = arith.addf %120, %121 : vector<16x128xf32>
    %123 = vector.extract_strided_slice %106 {offsets = [0, 256], sizes = [16, 128], strides = [1, 1]} : vector<16x512xf32> to vector<16x128xf32>
    %124 = math.tanh %123 : vector<16x128xf32>
    %125 = vector.extract_strided_slice %106 {offsets = [0, 384], sizes = [16, 128], strides = [1, 1]} : vector<16x512xf32> to vector<16x128xf32>
    %cst_48 = arith.constant 5.000000e-01 : f32
    %126 = vector.broadcast %cst_48 : f32 to vector<16x128xf32>
    %127 = arith.mulf %126, %125 : vector<16x128xf32>
    %128 = math.tanh %127 : vector<16x128xf32>
    %cst_49 = arith.constant 5.000000e-01 : f32
    %129 = vector.broadcast %cst_49 : f32 to vector<16x128xf32>
    %130 = arith.mulf %129, %128 : vector<16x128xf32>
    %cst_50 = arith.constant 5.000000e-01 : f32
    %131 = vector.broadcast %cst_50 : f32 to vector<16x128xf32>
    %132 = arith.addf %130, %131 : vector<16x128xf32>
    %133 = arith.mulf %122, %98 : vector<16x128xf32>
    %134 = arith.mulf %114, %124 : vector<16x128xf32>
    %135 = arith.addf %133, %134 : vector<16x128xf32>
    %136 = math.tanh %135 : vector<16x128xf32>
    %137 = arith.mulf %132, %136 : vector<16x128xf32>
    %138 = arith.truncf %137 : vector<16x128xf32> to vector<16x128xbf16>
    %c48 = arith.constant 48 : index
    %c0_51 = arith.constant 0 : index
    %139 = vector.load %arg8[%c48, %c0_51] : memref<112x128xbf16, #tpu.memory_space<vmem>>, vector<16x128xbf16>
    tpu.vector_store %arg8[%c48, %c0_51], %138 {strides = array<i32>} : memref<112x128xbf16, #tpu.memory_space<vmem>>, vector<16x128xbf16>,
    %140 = arith.truncf %137 : vector<16x128xf32> to vector<16x128xbf16>
    %c0_52 = arith.constant 0 : index
    %c0_53 = arith.constant 0 : index
    %141 = vector.load %arg3[%c0_52, %c0_53] : memref<128x512xbf16, #tpu.memory_space<vmem>>, vector<128x512xbf16>
    %cst_54 = arith.constant dense<0.000000e+00> : vector<16x512xf32>
    %142 = tpu.matmul %140, %141, %cst_54 {dimension_numbers = #tpu.dot_dimension_numbers<[1], [0], [0], [1], [0, 0, 1, 1], [], []>} : vector<16x128xbf16>, vector<128x512xbf16>, vector<16x512xf32> -> vector<16x512xf32>
    %143 = arith.addf %5, %142 : vector<16x512xf32>
    %144 = vector.extract_strided_slice %143 {offsets = [0, 0], sizes = [16, 128], strides = [1, 1]} : vector<16x512xf32> to vector<16x128xf32>
    %cst_55 = arith.constant 5.000000e-01 : f32
    %145 = vector.broadcast %cst_55 : f32 to vector<16x128xf32>
    %146 = arith.mulf %145, %144 : vector<16x128xf32>
    %147 = math.tanh %146 : vector<16x128xf32>
    %cst_56 = arith.constant 5.000000e-01 : f32
    %148 = vector.broadcast %cst_56 : f32 to vector<16x128xf32>
    %149 = arith.mulf %148, %147 : vector<16x128xf32>
    %cst_57 = arith.constant 5.000000e-01 : f32
    %150 = vector.broadcast %cst_57 : f32 to vector<16x128xf32>
    %151 = arith.addf %149, %150 : vector<16x128xf32>
    %152 = vector.extract_strided_slice %143 {offsets = [0, 128], sizes = [16, 128], strides = [1, 1]} : vector<16x512xf32> to vector<16x128xf32>
    %cst_58 = arith.constant 5.000000e-01 : f32
    %153 = vector.broadcast %cst_58 : f32 to vector<16x128xf32>
    %154 = arith.mulf %153, %152 : vector<16x128xf32>
    %155 = math.tanh %154 : vector<16x128xf32>
    %cst_59 = arith.constant 5.000000e-01 : f32
    %156 = vector.broadcast %cst_59 : f32 to vector<16x128xf32>
    %157 = arith.mulf %156, %155 : vector<16x128xf32>
    %cst_60 = arith.constant 5.000000e-01 : f32
    %158 = vector.broadcast %cst_60 : f32 to vector<16x128xf32>
    %159 = arith.addf %157, %158 : vector<16x128xf32>
    %160 = vector.extract_strided_slice %143 {offsets = [0, 256], sizes = [16, 128], strides = [1, 1]} : vector<16x512xf32> to vector<16x128xf32>
    %161 = math.tanh %160 : vector<16x128xf32>
    %162 = vector.extract_strided_slice %143 {offsets = [0, 384], sizes = [16, 128], strides = [1, 1]} : vector<16x512xf32> to vector<16x128xf32>
    %cst_61 = arith.constant 5.000000e-01 : f32
    %163 = vector.broadcast %cst_61 : f32 to vector<16x128xf32>
    %164 = arith.mulf %163, %162 : vector<16x128xf32>
    %165 = math.tanh %164 : vector<16x128xf32>
    %cst_62 = arith.constant 5.000000e-01 : f32
    %166 = vector.broadcast %cst_62 : f32 to vector<16x128xf32>
    %167 = arith.mulf %166, %165 : vector<16x128xf32>
    %cst_63 = arith.constant 5.000000e-01 : f32
    %168 = vector.broadcast %cst_63 : f32 to vector<16x128xf32>
    %169 = arith.addf %167, %168 : vector<16x128xf32>
    %170 = arith.mulf %159, %135 : vector<16x128xf32>
    %171 = arith.mulf %151, %161 : vector<16x128xf32>
    %172 = arith.addf %170, %171 : vector<16x128xf32>
    %173 = math.tanh %172 : vector<16x128xf32>
    %174 = arith.mulf %169, %173 : vector<16x128xf32>
    %175 = arith.truncf %174 : vector<16x128xf32> to vector<16x128xbf16>
    %c64 = arith.constant 64 : index
    %c0_64 = arith.constant 0 : index
    %176 = vector.load %arg8[%c64, %c0_64] : memref<112x128xbf16, #tpu.memory_space<vmem>>, vector<16x128xbf16>
    tpu.vector_store %arg8[%c64, %c0_64], %175 {strides = array<i32>} : memref<112x128xbf16, #tpu.memory_space<vmem>>, vector<16x128xbf16>,
    %177 = arith.truncf %174 : vector<16x128xf32> to vector<16x128xbf16>
    %c0_65 = arith.constant 0 : index
    %c0_66 = arith.constant 0 : index
    %178 = vector.load %arg3[%c0_65, %c0_66] : memref<128x512xbf16, #tpu.memory_space<vmem>>, vector<128x512xbf16>
    %cst_67 = arith.constant dense<0.000000e+00> : vector<16x512xf32>
    %179 = tpu.matmul %177, %178, %cst_67 {dimension_numbers = #tpu.dot_dimension_numbers<[1], [0], [0], [1], [0, 0, 1, 1], [], []>} : vector<16x128xbf16>, vector<128x512xbf16>, vector<16x512xf32> -> vector<16x512xf32>
    %180 = arith.addf %5, %179 : vector<16x512xf32>
    %181 = vector.extract_strided_slice %180 {offsets = [0, 0], sizes = [16, 128], strides = [1, 1]} : vector<16x512xf32> to vector<16x128xf32>
    %cst_68 = arith.constant 5.000000e-01 : f32
    %182 = vector.broadcast %cst_68 : f32 to vector<16x128xf32>
    %183 = arith.mulf %182, %181 : vector<16x128xf32>
    %184 = math.tanh %183 : vector<16x128xf32>
    %cst_69 = arith.constant 5.000000e-01 : f32
    %185 = vector.broadcast %cst_69 : f32 to vector<16x128xf32>
    %186 = arith.mulf %185, %184 : vector<16x128xf32>
    %cst_70 = arith.constant 5.000000e-01 : f32
    %187 = vector.broadcast %cst_70 : f32 to vector<16x128xf32>
    %188 = arith.addf %186, %187 : vector<16x128xf32>
    %189 = vector.extract_strided_slice %180 {offsets = [0, 128], sizes = [16, 128], strides = [1, 1]} : vector<16x512xf32> to vector<16x128xf32>
    %cst_71 = arith.constant 5.000000e-01 : f32
    %190 = vector.broadcast %cst_71 : f32 to vector<16x128xf32>
    %191 = arith.mulf %190, %189 : vector<16x128xf32>
    %192 = math.tanh %191 : vector<16x128xf32>
    %cst_72 = arith.constant 5.000000e-01 : f32
    %193 = vector.broadcast %cst_72 : f32 to vector<16x128xf32>
    %194 = arith.mulf %193, %192 : vector<16x128xf32>
    %cst_73 = arith.constant 5.000000e-01 : f32
    %195 = vector.broadcast %cst_73 : f32 to vector<16x128xf32>
    %196 = arith.addf %194, %195 : vector<16x128xf32>
    %197 = vector.extract_strided_slice %180 {offsets = [0, 256], sizes = [16, 128], strides = [1, 1]} : vector<16x512xf32> to vector<16x128xf32>
    %198 = math.tanh %197 : vector<16x128xf32>
    %199 = vector.extract_strided_slice %180 {offsets = [0, 384], sizes = [16, 128], strides = [1, 1]} : vector<16x512xf32> to vector<16x128xf32>
    %cst_74 = arith.constant 5.000000e-01 : f32
    %200 = vector.broadcast %cst_74 : f32 to vector<16x128xf32>
    %201 = arith.mulf %200, %199 : vector<16x128xf32>
    %202 = math.tanh %201 : vector<16x128xf32>
    %cst_75 = arith.constant 5.000000e-01 : f32
    %203 = vector.broadcast %cst_75 : f32 to vector<16x128xf32>
    %204 = arith.mulf %203, %202 : vector<16x128xf32>
    %cst_76 = arith.constant 5.000000e-01 : f32
    %205 = vector.broadcast %cst_76 : f32 to vector<16x128xf32>
    %206 = arith.addf %204, %205 : vector<16x128xf32>
    %207 = arith.mulf %196, %172 : vector<16x128xf32>
    %208 = arith.mulf %188, %198 : vector<16x128xf32>
    %209 = arith.addf %207, %208 : vector<16x128xf32>
    %210 = math.tanh %209 : vector<16x128xf32>
    %211 = arith.mulf %206, %210 : vector<16x128xf32>
    %212 = arith.truncf %211 : vector<16x128xf32> to vector<16x128xbf16>
    %c80 = arith.constant 80 : index
    %c0_77 = arith.constant 0 : index
    %213 = vector.load %arg8[%c80, %c0_77] : memref<112x128xbf16, #tpu.memory_space<vmem>>, vector<16x128xbf16>
    tpu.vector_store %arg8[%c80, %c0_77], %212 {strides = array<i32>} : memref<112x128xbf16, #tpu.memory_space<vmem>>, vector<16x128xbf16>,
    %214 = arith.truncf %211 : vector<16x128xf32> to vector<16x128xbf16>
    %c0_78 = arith.constant 0 : index
    %c0_79 = arith.constant 0 : index
    %215 = vector.load %arg3[%c0_78, %c0_79] : memref<128x512xbf16, #tpu.memory_space<vmem>>, vector<128x512xbf16>
    %cst_80 = arith.constant dense<0.000000e+00> : vector<16x512xf32>
    %216 = tpu.matmul %214, %215, %cst_80 {dimension_numbers = #tpu.dot_dimension_numbers<[1], [0], [0], [1], [0, 0, 1, 1], [], []>} : vector<16x128xbf16>, vector<128x512xbf16>, vector<16x512xf32> -> vector<16x512xf32>
    %217 = arith.addf %5, %216 : vector<16x512xf32>
    %218 = vector.extract_strided_slice %217 {offsets = [0, 0], sizes = [16, 128], strides = [1, 1]} : vector<16x512xf32> to vector<16x128xf32>
    %cst_81 = arith.constant 5.000000e-01 : f32
    %219 = vector.broadcast %cst_81 : f32 to vector<16x128xf32>
    %220 = arith.mulf %219, %218 : vector<16x128xf32>
    %221 = math.tanh %220 : vector<16x128xf32>
    %cst_82 = arith.constant 5.000000e-01 : f32
    %222 = vector.broadcast %cst_82 : f32 to vector<16x128xf32>
    %223 = arith.mulf %222, %221 : vector<16x128xf32>
    %cst_83 = arith.constant 5.000000e-01 : f32
    %224 = vector.broadcast %cst_83 : f32 to vector<16x128xf32>
    %225 = arith.addf %223, %224 : vector<16x128xf32>
    %226 = vector.extract_strided_slice %217 {offsets = [0, 128], sizes = [16, 128], strides = [1, 1]} : vector<16x512xf32> to vector<16x128xf32>
    %cst_84 = arith.constant 5.000000e-01 : f32
    %227 = vector.broadcast %cst_84 : f32 to vector<16x128xf32>
    %228 = arith.mulf %227, %226 : vector<16x128xf32>
    %229 = math.tanh %228 : vector<16x128xf32>
    %cst_85 = arith.constant 5.000000e-01 : f32
    %230 = vector.broadcast %cst_85 : f32 to vector<16x128xf32>
    %231 = arith.mulf %230, %229 : vector<16x128xf32>
    %cst_86 = arith.constant 5.000000e-01 : f32
    %232 = vector.broadcast %cst_86 : f32 to vector<16x128xf32>
    %233 = arith.addf %231, %232 : vector<16x128xf32>
    %234 = vector.extract_strided_slice %217 {offsets = [0, 256], sizes = [16, 128], strides = [1, 1]} : vector<16x512xf32> to vector<16x128xf32>
    %235 = math.tanh %234 : vector<16x128xf32>
    %236 = vector.extract_strided_slice %217 {offsets = [0, 384], sizes = [16, 128], strides = [1, 1]} : vector<16x512xf32> to vector<16x128xf32>
    %cst_87 = arith.constant 5.000000e-01 : f32
    %237 = vector.broadcast %cst_87 : f32 to vector<16x128xf32>
    %238 = arith.mulf %237, %236 : vector<16x128xf32>
    %239 = math.tanh %238 : vector<16x128xf32>
    %cst_88 = arith.constant 5.000000e-01 : f32
    %240 = vector.broadcast %cst_88 : f32 to vector<16x128xf32>
    %241 = arith.mulf %240, %239 : vector<16x128xf32>
    %cst_89 = arith.constant 5.000000e-01 : f32
    %242 = vector.broadcast %cst_89 : f32 to vector<16x128xf32>
    %243 = arith.addf %241, %242 : vector<16x128xf32>
    %244 = arith.mulf %233, %209 : vector<16x128xf32>
    %245 = arith.mulf %225, %235 : vector<16x128xf32>
    %246 = arith.addf %244, %245 : vector<16x128xf32>
    %247 = math.tanh %246 : vector<16x128xf32>
    %248 = arith.mulf %243, %247 : vector<16x128xf32>
    %249 = arith.truncf %248 : vector<16x128xf32> to vector<16x128xbf16>
    %c96 = arith.constant 96 : index
    %c0_90 = arith.constant 0 : index
    %250 = vector.load %arg8[%c96, %c0_90] : memref<112x128xbf16, #tpu.memory_space<vmem>>, vector<16x128xbf16>
    tpu.vector_store %arg8[%c96, %c0_90], %249 {strides = array<i32>} : memref<112x128xbf16, #tpu.memory_space<vmem>>, vector<16x128xbf16>,
    %c0_91 = arith.constant 0 : index
    %c0_92 = arith.constant 0 : index
    %251 = vector.load %arg8[%c0_91, %c0_92] : memref<112x128xbf16, #tpu.memory_space<vmem>>, vector<112x128xbf16>
    %c0_93 = arith.constant 0 : index
    %c0_94 = arith.constant 0 : index
    %252 = vector.load %arg5[%c0_93, %c0_94] : memref<128x128xbf16, #tpu.memory_space<vmem>>, vector<128x128xbf16>
    %cst_95 = arith.constant dense<0.000000e+00> : vector<112x128xf32>
    %253 = tpu.matmul %251, %252, %cst_95 {dimension_numbers = #tpu.dot_dimension_numbers<[1], [0], [0], [1], [0, 0, 1, 1], [], []>} : vector<112x128xbf16>, vector<128x128xbf16>, vector<112x128xf32> -> vector<112x128xf32>
    %c0_96 = arith.constant 0 : index
    %c0_97 = arith.constant 0 : index
    %254 = vector.load %arg6[%c0_96, %c0_97] : memref<1x128xf32, #tpu.memory_space<vmem>>, vector<1x128xf32>
    %255 = vector.broadcast %254 : vector<1x128xf32> to vector<112x128xf32>
    %256 = arith.addf %253, %255 : vector<112x128xf32>
    %257 = vector.extract_strided_slice %256 {offsets = [0, 0], sizes = [16, 128], strides = [1, 1]} : vector<112x128xf32> to vector<16x128xf32>
    %c0_98 = arith.constant 0 : index
    %c0_99 = arith.constant 0 : index
    %258 = vector.load %arg7[%c0_98, %c0_99] : memref<16x896xf32, #tpu.memory_space<vmem>>, vector<16x128xf32>
    tpu.vector_store %arg7[%c0_98, %c0_99], %257 {strides = array<i32>} : memref<16x896xf32, #tpu.memory_space<vmem>>, vector<16x128xf32>,
    %259 = vector.extract_strided_slice %256 {offsets = [16, 0], sizes = [16, 128], strides = [1, 1]} : vector<112x128xf32> to vector<16x128xf32>
    %c0_100 = arith.constant 0 : index
    %c128 = arith.constant 128 : index
    %260 = vector.load %arg7[%c0_100, %c128] : memref<16x896xf32, #tpu.memory_space<vmem>>, vector<16x128xf32>
    tpu.vector_store %arg7[%c0_100, %c128], %259 {strides = array<i32>} : memref<16x896xf32, #tpu.memory_space<vmem>>, vector<16x128xf32>,
    %261 = vector.extract_strided_slice %256 {offsets = [32, 0], sizes = [16, 128], strides = [1, 1]} : vector<112x128xf32> to vector<16x128xf32>
    %c0_101 = arith.constant 0 : index
    %c256 = arith.constant 256 : index
    %262 = vector.load %arg7[%c0_101, %c256] : memref<16x896xf32, #tpu.memory_space<vmem>>, vector<16x128xf32>
    tpu.vector_store %arg7[%c0_101, %c256], %261 {strides = array<i32>} : memref<16x896xf32, #tpu.memory_space<vmem>>, vector<16x128xf32>,
    %263 = vector.extract_strided_slice %256 {offsets = [48, 0], sizes = [16, 128], strides = [1, 1]} : vector<112x128xf32> to vector<16x128xf32>
    %c0_102 = arith.constant 0 : index
    %c384 = arith.constant 384 : index
    %264 = vector.load %arg7[%c0_102, %c384] : memref<16x896xf32, #tpu.memory_space<vmem>>, vector<16x128xf32>
    tpu.vector_store %arg7[%c0_102, %c384], %263 {strides = array<i32>} : memref<16x896xf32, #tpu.memory_space<vmem>>, vector<16x128xf32>,
    %265 = vector.extract_strided_slice %256 {offsets = [64, 0], sizes = [16, 128], strides = [1, 1]} : vector<112x128xf32> to vector<16x128xf32>
    %c0_103 = arith.constant 0 : index
    %c512 = arith.constant 512 : index
    %266 = vector.load %arg7[%c0_103, %c512] : memref<16x896xf32, #tpu.memory_space<vmem>>, vector<16x128xf32>
    tpu.vector_store %arg7[%c0_103, %c512], %265 {strides = array<i32>} : memref<16x896xf32, #tpu.memory_space<vmem>>, vector<16x128xf32>,
    %267 = vector.extract_strided_slice %256 {offsets = [80, 0], sizes = [16, 128], strides = [1, 1]} : vector<112x128xf32> to vector<16x128xf32>
    %c0_104 = arith.constant 0 : index
    %c640 = arith.constant 640 : index
    %268 = vector.load %arg7[%c0_104, %c640] : memref<16x896xf32, #tpu.memory_space<vmem>>, vector<16x128xf32>
    tpu.vector_store %arg7[%c0_104, %c640], %267 {strides = array<i32>} : memref<16x896xf32, #tpu.memory_space<vmem>>, vector<16x128xf32>,
    %269 = vector.extract_strided_slice %256 {offsets = [96, 0], sizes = [16, 128], strides = [1, 1]} : vector<112x128xf32> to vector<16x128xf32>
    %c0_105 = arith.constant 0 : index
    %c768 = arith.constant 768 : index
    %270 = vector.load %arg7[%c0_105, %c768] : memref<16x896xf32, #tpu.memory_space<vmem>>, vector<16x128xf32>
    tpu.vector_store %arg7[%c0_105, %c768], %269 {strides = array<i32>} : memref<16x896xf32, #tpu.memory_space<vmem>>, vector<16x128xf32>,
    return
  }
  func.func @transform_0(%arg0: i32) -> (i32, i32) {
    %c0_i32 = arith.constant 0 : i32
    %c0_i32_0 = arith.constant 0 : i32
    return %arg0, %c0_i32 : i32, i32
  }
  func.func @transform_1(%arg0: i32) -> (i32, i32) {
    %c0_i32 = arith.constant 0 : i32
    %c0_i32_0 = arith.constant 0 : i32
    %c0_i32_1 = arith.constant 0 : i32
    return %c0_i32, %c0_i32_0 : i32, i32
  }
  func.func @transform_2(%arg0: i32) -> (i32, i32) {
    %c0_i32 = arith.constant 0 : i32
    %c0_i32_0 = arith.constant 0 : i32
    %c0_i32_1 = arith.constant 0 : i32
    return %c0_i32, %c0_i32_0 : i32, i32
  }
  func.func @transform_3(%arg0: i32) -> (i32, i32) {
    %c0_i32 = arith.constant 0 : i32
    %c0_i32_0 = arith.constant 0 : i32
    %c0_i32_1 = arith.constant 0 : i32
    return %c0_i32, %c0_i32_0 : i32, i32
  }
  func.func @transform_4(%arg0: i32) -> (i32, i32) {
    %c0_i32 = arith.constant 0 : i32
    %c0_i32_0 = arith.constant 0 : i32
    %c0_i32_1 = arith.constant 0 : i32
    return %c0_i32, %c0_i32_0 : i32, i32
  }
  func.func @transform_5(%arg0: i32) -> (i32, i32) {
    %c0_i32 = arith.constant 0 : i32
    %c0_i32_0 = arith.constant 0 : i32
    %c0_i32_1 = arith.constant 0 : i32
    return %c0_i32, %c0_i32_0 : i32, i32
  }
  func.func @transform_6(%arg0: i32) -> (i32, i32) {
    %c0_i32 = arith.constant 0 : i32
    %c0_i32_0 = arith.constant 0 : i32
    return %arg0, %c0_i32 : i32, i32
  }
}

</mosaic_0001>

<bundles_post_ra>
// kernel: decoder_forward.1
= control target key start
LH: loop header
LB: loop body
LE: loop exit
PB: predicated region body
PF: predicated region fallthrough
CT: control target
= control target key end

     0   :  { %11 = vsyncpa [#allocation4], 0  ;;  %s3864_s0 = inlined_call_operand.vmem [shape: bf16[16,128], index: 0, kind: input, shape index: {}]   ;;  %s3865_s1 = inlined_call_operand.hbm [shape: bf16[128,512], index: 1, kind: input, shape index: {}]   ;;  %s3866_s2 = inlined_call_operand.hbm [shape: bf16[128,512], index: 2, kind: input, shape index: {}]   ;;  %s3867_s3 = inlined_call_operand.vmem [shape: f32[1,512], index: 3, kind: input, shape index: {}]   ;;  %s3868_s4 = inlined_call_operand.hbm [shape: bf16[128,128], index: 4, kind: input, shape index: {}]   ;;  %s3869_s5 = inlined_call_operand.vmem [shape: f32[1,128], index: 5, kind: input, shape index: {}]   ;;  %s3870_s6 = inlined_call_operand.vmem [shape: f32[16,896], index: 6, kind: output, shape index: {}]  }
   0x1   :  { %12 = vsyncpa [#allocation6], 0  ;;  %s3192_s21 = smov [#allocation5]   ;;  %s3193_s23 = smov [#allocation3]  }
   0x2   :  { %s32_s22 = sshll.u32 %s3192_s21, 4  ;;  %s20_s24 = sshll.u32 %s3193_s23, 4  ;;  %s33_s22 = int_to_ptr.vmem [resolvable:$true] %s32_s22  ;;  %s3237_s24 = int_to_ptr.vmem [resolvable:$true] %s20_s24 }
   0x3   :  { %s3122_s27 = scalar_lea.hbm %s3866_s2, 4096 }
   0x4   :  { %p3123_p0 = scmp.ne.s32.totalorder %s3866_s2, %s3122_s27  ;;  %p3126_p1 = scmp.lt.u32.totalorder %s3122_s27, %s3866_s2 }
   0x6   :  { %p3128_p2 = pnand %p3126_p1, %p3123_p0 }
   0x8   :  { %3131 = shalt.err (!%p3128_p2)
}
   0x9   :  { %s3132_s8 = scalar_lea.vmem %s33_s22, 4096  ;;  %p3137_p4 = scmp.lt.s32.totalorder %s33_s22, %s33_s22 }
   0xa   :  { %p3133_p3 = scmp.ne.s32.totalorder %s33_s22, %s3132_s8  ;;  %p3138_p5 = scmp.lt.s32.totalorder %s3132_s8, %s3132_s8 }
   0xc   :  { %p3139_p6 = por %p3138_p5, %p3137_p4 }
   0xe   :  { %p3140_p7 = pnand %p3139_p6, %p3133_p3 }
  0x10   :  { %3143 = shalt.err (!%p3140_p7)
}
  0x11   :  { %s3194_s9 = smov 256   ;;  %s3195_s10 = smov 16  }
  0x12   :  { %38 = dma.hbm_to_vmem [thread:$0]  %s3866_s2, 4096, %s33_s22, [#allocation6], %s3194_s9, %s3194_s9, %s3195_s10  }
  0x13   :  { %s3144_s15 = scalar_lea.hbm %s3865_s1, 4096 }
  0x14   :  { %p3145_p8 = scmp.ne.s32.totalorder %s3865_s1, %s3144_s15  ;;  %p3148_p9 = scmp.lt.u32.totalorder %s3144_s15, %s3865_s1 }
  0x16   :  { %p3150_p10 = pnand %p3148_p9, %p3145_p8 }
  0x18   :  { %3153 = shalt.err (!%p3150_p10)
}
  0x19   :  { %s3154_s20 = scalar_lea.vmem %s3237_s24, 4096  ;;  %p3159_p12 = scmp.lt.s32.totalorder %s3237_s24, %s3237_s24 }
  0x1a   :  { %p3155_p11 = scmp.ne.s32.totalorder %s3237_s24, %s3154_s20  ;;  %p3160_p13 = scmp.lt.s32.totalorder %s3154_s20, %s3154_s20 }
  0x1c   :  { %p3161_p0 = por %p3160_p13, %p3159_p12 }
  0x1e   :  { %p3162_p1 = pnand %p3161_p0, %p3155_p11 }
  0x20   :  { %3165 = shalt.err (!%p3162_p1)
}
  0x21   :  { %26 = dma.hbm_to_vmem [thread:$0]  %s3865_s1, 4096, %s3237_s24, [#allocation4], %s3194_s9, %s3194_s9, %s3195_s10  }
  0x22   :  { %s3196_s22 = smov [#allocation7]   ;;  %s3166_s27 = scalar_lea.hbm %s3868_s4, 1024 }
  0x23   :  { %s46_s23 = sshll.u32 %s3196_s22, 4  ;;  %p3167_p2 = scmp.ne.s32.totalorder %s3868_s4, %s3166_s27  ;;  %s47_s23 = int_to_ptr.vmem [resolvable:$true] %s46_s23 }
  0x24   :  { %p3170_p3 = scmp.lt.u32.totalorder %s3166_s27, %s3868_s4 }
  0x26   :  { %p3172_p4 = pnand %p3170_p3, %p3167_p2 }
  0x28   :  { %3175 = shalt.err (!%p3172_p4)
}
  0x29   :  { %s3176_s8 = scalar_lea.vmem %s47_s23, 1024  ;;  %p3181_p6 = scmp.lt.s32.totalorder %s47_s23, %s47_s23 }
  0x2a   :  { %p3177_p5 = scmp.ne.s32.totalorder %s47_s23, %s3176_s8  ;;  %p3182_p7 = scmp.lt.s32.totalorder %s3176_s8, %s3176_s8 }
  0x2c   :  { %p3183_p8 = por %p3182_p7, %p3181_p6 }
  0x2e   :  { %p3184_p9 = pnand %p3183_p8, %p3177_p5 }
  0x30   :  { %3187 = shalt.err (!%p3184_p9)
}
  0x31   :  { %s3197_s1 = smov 64   ;;  %s3198_s24 = smov 4  }
  0x32   :  { %52 = dma.hbm_to_vmem [thread:$0]  %s3868_s4, 1024, %s47_s23, [#allocation6], %s3197_s1, %s3197_s1, %s3198_s24  }
  0x33   :  { %3188 = dma.done.wait [#allocation4], 4096  }
  0x34   :  { %3189 = vsyncadd [#allocation4], 4294963200 }
  0x35   :  { %3190 = dma.done.wait [#allocation6], 5120  }
  0x36   :  { %3191 = vsyncadd [#allocation6], 4294962176  ;;  %v3871_v0 = vmov 0   ;;  %v2833_v1 = vld [vmem:[#allocation3 + $0x4] ss:$16 sps:$4 sm:$0xff]   ;;  %vm3201_vm0 = vmmov 0  }
  0x37   :  { %319 = vmatprep.mubr.bf16.mxu1 %v3871_v0  ;;  %623 = vmatprep.mubr.bf16.mxu0 %v3871_v0  ;;  %v2835_v2 = vld [vmem:[#allocation3] ss:$16 sps:$4 sm:$0xff]   ;;  %v2836_v3 = vld [vmem:[#allocation3 + $0x24] ss:$16 sps:$4 sm:$0xff]   ;;  %v2860_v17 = vld [vmem:[#allocation3 + $0xc] ss:$16 sps:$4 sm:$0xff]  }
  0x38   :  { %287 = vmatprep.subr.bf16.mxu1 %v2833_v1  ;;  %v2838_v4 = vld [vmem:[#allocation3 + $0x20] ss:$16 sps:$4 sm:$0xff]   ;;  %v2839_v5 = vld [vmem:[#allocation3 + $0x44] ss:$16 sps:$4 sm:$0xff]   ;;  %v2858_v19 = vld [vmem:[#allocation3 + $0x8] ss:$16 sps:$4 sm:$0xff]  }
  0x39   :  { %288 = vmatpush1.bf16.msra.mxu1 %v2835_v2  ;;  %v2841_v6 = vld [vmem:[#allocation3 + $0x40] ss:$16 sps:$4 sm:$0xff]   ;;  %v2842_v7 = vld [vmem:[#allocation3 + $0x64] ss:$16 sps:$4 sm:$0xff]   ;;  %v2863_v20 = vld [vmem:[#allocation3 + $0x2c] ss:$16 sps:$4 sm:$0xff]  }
  0x3a   :  { %289 = vmatprep.subr.bf16.mxu1 %v2836_v3  ;;  %v2844_v8 = vld [vmem:[#allocation3 + $0x60] ss:$16 sps:$4 sm:$0xff]   ;;  %v2845_v9 = vld [vmem:[#allocation3 + $0x84] ss:$16 sps:$4 sm:$0xff]   ;;  %v2861_v21 = vld [vmem:[#allocation3 + $0x28] ss:$16 sps:$4 sm:$0xff]  }
  0x3b   :  { %v2847_v10 = vld [vmem:[#allocation3 + $0x80] ss:$16 sps:$4 sm:$0xff]   ;;  %v2848_v11 = vld [vmem:[#allocation3 + $0xa4] ss:$16 sps:$4 sm:$0xff]   ;;  %v2866_v22 = vld [vmem:[#allocation3 + $0x4c] ss:$16 sps:$4 sm:$0xff]  }
  0x3c   :  { %v2850_v12 = vld [vmem:[#allocation3 + $0xa0] ss:$16 sps:$4 sm:$0xff]   ;;  %v2851_v13 = vld [vmem:[#allocation3 + $0xc4] ss:$16 sps:$4 sm:$0xff]   ;;  %v2864_v23 = vld [vmem:[#allocation3 + $0x48] ss:$16 sps:$4 sm:$0xff]  }
  0x3d   :  { %290 = vmatpush1.bf16.msra.mxu1 %v2838_v4  ;;  %v2853_v14 = vld [vmem:[#allocation3 + $0xc0] ss:$16 sps:$4 sm:$0xff]   ;;  %v2854_v15 = vld [vmem:[#allocation3 + $0xe4] ss:$16 sps:$4 sm:$0xff]   ;;  %v2869_v24 = vld [vmem:[#allocation3 + $0x6c] ss:$16 sps:$4 sm:$0xff]  }
  0x3e   :  { %291 = vmatprep.subr.bf16.mxu1 %v2839_v5  ;;  %v2856_v16 = vld [vmem:[#allocation3 + $0xe0] ss:$16 sps:$4 sm:$0xff]   ;;  %v2867_v25 = vld [vmem:[#allocation3 + $0x68] ss:$16 sps:$4 sm:$0xff]   ;;  %v2872_v26 = vld [vmem:[#allocation3 + $0x8c] ss:$16 sps:$4 sm:$0xff]  }
  0x3f   :  { %v2857_v18 = vld [vmem:[%s3864_s0] sm:$0xff]   ;;  %v2870_v27 = vld [vmem:[#allocation3 + $0x88] ss:$16 sps:$4 sm:$0xff]   ;;  %v2875_v28 = vld [vmem:[#allocation3 + $0xac] ss:$16 sps:$4 sm:$0xff]  }
  0x40   :  { %v2873_v29 = vld [vmem:[#allocation3 + $0xa8] ss:$16 sps:$4 sm:$0xff]   ;;  %v2878_v30 = vld [vmem:[#allocation3 + $0xcc] ss:$16 sps:$4 sm:$0xff]   ;;  %v3287_v34 = vld [vmem:[#allocation5 + $0x4] ss:$16 sps:$4 sm:$0xff]  }
  0x41   :  { %292 = vmatpush1.bf16.msra.mxu1 %v2841_v6  ;;  %v2876_v31 = vld [vmem:[#allocation3 + $0xc8] ss:$16 sps:$4 sm:$0xff]   ;;  %v2881_v32 = vld [vmem:[#allocation3 + $0xec] ss:$16 sps:$4 sm:$0xff]   ;;  %v3293_v37 = vld [vmem:[#allocation5] ss:$16 sps:$4 sm:$0xff]   ;;  %591 = vmatprep.subr.bf16.mxu0 %v3287_v34  ;;  %v101_v6 = vlaneseq }
  0x42   :  { %293 = vmatprep.subr.bf16.mxu1 %v2842_v7  ;;  %v2879_v33 = vld [vmem:[#allocation3 + $0xe8] ss:$16 sps:$4 sm:$0xff]   ;;  %v3289_v35 = vld [vmem:[#allocation5 + $0xc] ss:$16 sps:$4 sm:$0xff]   ;;  %592 = vmatpush1.bf16.msra.mxu0 %v3293_v37  ;;  %v3299_v38 = vld [vmem:[#allocation5 + $0x24] ss:$16 sps:$4 sm:$0xff]  }
  0x43   :  { %v3291_v36 = vld [vmem:[#allocation5 + $0x8] ss:$16 sps:$4 sm:$0xff]   ;;  %v3301_v39 = vld [vmem:[#allocation5 + $0x2c] ss:$16 sps:$4 sm:$0xff]   ;;  %v3305_v41 = vld [vmem:[#allocation5 + $0x20] ss:$16 sps:$4 sm:$0xff]   ;;  %593 = vmatprep.subr.bf16.mxu0 %v3299_v38 }
  0x44   :  { %v3303_v40 = vld [vmem:[#allocation5 + $0x28] ss:$16 sps:$4 sm:$0xff]   ;;  %v3309_v42 = vld [vmem:[#allocation5 + $0x44] ss:$16 sps:$4 sm:$0xff]   ;;  %v3311_v43 = vld [vmem:[#allocation5 + $0x4c] ss:$16 sps:$4 sm:$0xff]  }
  0x45   :  { %294 = vmatpush1.bf16.msra.mxu1 %v2844_v8  ;;  %v3315_v44 = vld [vmem:[#allocation5 + $0x48] ss:$16 sps:$4 sm:$0xff]   ;;  %v3317_v45 = vld [vmem:[#allocation5 + $0x40] ss:$16 sps:$4 sm:$0xff]   ;;  %v3321_v46 = vld [vmem:[#allocation5 + $0x64] ss:$16 sps:$4 sm:$0xff]  }
  0x46   :  { %295 = vmatprep.subr.bf16.mxu1 %v2845_v9  ;;  %594 = vmatpush1.bf16.msra.mxu0 %v3305_v41  ;;  %v3323_v47 = vld [vmem:[#allocation5 + $0x6c] ss:$16 sps:$4 sm:$0xff]   ;;  %v3327_v48 = vld [vmem:[#allocation5 + $0x68] ss:$16 sps:$4 sm:$0xff]   ;;  %v3329_v49 = vld [vmem:[#allocation5 + $0x60] ss:$16 sps:$4 sm:$0xff]  }
  0x47   :  { %595 = vmatprep.subr.bf16.mxu0 %v3309_v42  ;;  %v3333_v50 = vld [vmem:[#allocation5 + $0x84] ss:$16 sps:$4 sm:$0xff]   ;;  %v3335_v51 = vld [vmem:[#allocation5 + $0x8c] ss:$16 sps:$4 sm:$0xff]   ;;  %v3339_v52 = vld [vmem:[#allocation5 + $0x88] ss:$16 sps:$4 sm:$0xff]  }
  0x48   :  { %v3341_v53 = vld [vmem:[#allocation5 + $0x80] ss:$16 sps:$4 sm:$0xff]   ;;  %v3345_v54 = vld [vmem:[#allocation5 + $0xa4] ss:$16 sps:$4 sm:$0xff]   ;;  %v3347_v55 = vld [vmem:[#allocation5 + $0xac] ss:$16 sps:$4 sm:$0xff]  }
  0x49   :  { %296 = vmatpush1.bf16.msra.mxu1 %v2847_v10  ;;  %v3351_v56 = vld [vmem:[#allocation5 + $0xa8] ss:$16 sps:$4 sm:$0xff]   ;;  %v3353_v57 = vld [vmem:[#allocation5 + $0xa0] ss:$16 sps:$4 sm:$0xff]   ;;  %v3357_v58 = vld [vmem:[#allocation5 + $0xc4] ss:$16 sps:$4 sm:$0xff]  }
  0x4a   :  { %297 = vmatprep.subr.bf16.mxu1 %v2848_v11  ;;  %596 = vmatpush1.bf16.msra.mxu0 %v3317_v45  ;;  %v3359_v59 = vld [vmem:[#allocation5 + $0xcc] ss:$16 sps:$4 sm:$0xff]   ;;  %v3363_v60 = vld [vmem:[#allocation5 + $0xc8] ss:$16 sps:$4 sm:$0xff]   ;;  %v3365_v61 = vld [vmem:[#allocation5 + $0xc0] ss:$16 sps:$4 sm:$0xff]  }
  0x4b   :  { %597 = vmatprep.subr.bf16.mxu0 %v3321_v46  ;;  %v3369_v62 = vld [vmem:[#allocation5 + $0xe4] ss:$16 sps:$4 sm:$0xff]   ;;  %v3371_v63 = vld [vmem:[#allocation5 + $0xec] ss:$16 sps:$4 sm:$0xff]   ;;  %v3375_v1 = vld [vmem:[#allocation5 + $0xe8] ss:$16 sps:$4 sm:$0xff]  }
  0x4c   :  { %v3377_v2 = vld [vmem:[#allocation5 + $0xe0] ss:$16 sps:$4 sm:$0xff]   ;;  %v3389_v8 = vshrl.u32 %v101_v6, 7 }
  0x4d   :  { %298 = vmatpush1.bf16.msra.mxu1 %v2850_v12  ;;  %v3395_v10 = vld [vmem:[%s3867_s3] sm:$0xf] }
  0x4e   :  { %299 = vmatprep.subr.bf16.mxu1 %v2851_v13  ;;  %598 = vmatpush1.bf16.msra.mxu0 %v3329_v49  ;;  %v103_v9 = vsub.s32 0, %v3389_v8 }
  0x4f   :  { %599 = vmatprep.subr.bf16.mxu0 %v3333_v50 }
  0x50   :  { %v104_v11 = vrot.slane %v3395_v10, %v103_v9 }
  0x51   :  { %300 = vmatpush1.bf16.msra.mxu1 %v2853_v14 }
  0x52   :  { %301 = vmatprep.subr.bf16.mxu1 %v2854_v15  ;;  %600 = vmatpush1.bf16.msra.mxu0 %v3341_v53  ;;  %v111_v15 = vsub.s32 2, %v3389_v8 }
  0x53   :  { %601 = vmatprep.subr.bf16.mxu0 %v3345_v54 }
  0x55   :  { %302 = vmatpush1.bf16.msra.mxu1 %v2856_v16 }
  0x56   :  { %330 = vmatprep.subr.bf16.mxu1 %v2860_v17  ;;  %602 = vmatpush1.bf16.msra.mxu0 %v3353_v57  ;;  %v115_v17 = vsub.s32 3, %v3389_v8 }
  0x57   :  { %603 = vmatprep.subr.bf16.mxu0 %v3357_v58 }
  0x58   :  { %320 = vmatmul.mubr.bf16.vlgmr.msra.gmra.mrb[0].mxu1 %v2857_v18 }
  0x59   :  { %331 = vmatpush1.bf16.msra.mxu1 %v2858_v19  ;;  %362 = vmatprep.mubr.bf16.mxu1 %v3871_v0  ;;  %v116_v19 = vrot.slane %v3395_v10, %v115_v17 }
  0x5a   :  { %332 = vmatprep.subr.bf16.mxu1 %v2863_v20  ;;  %604 = vmatpush1.bf16.msra.mxu0 %v3365_v61 }
  0x5b   :  { %605 = vmatprep.subr.bf16.mxu0 %v3369_v62 }
  0x5d   :  { %333 = vmatpush1.bf16.msra.mxu1 %v2861_v21 }
  0x5e   :  { %334 = vmatprep.subr.bf16.mxu1 %v2866_v22  ;;  %606 = vmatpush1.bf16.msra.mxu0 %v3377_v2 }
  0x5f   :  { %915 = vmatprep.subr.bf16.mxu0 %v3287_v34 }
  0x61   :  { %335 = vmatpush1.bf16.msra.mxu1 %v2864_v23 }
  0x62   :  { %336 = vmatprep.subr.bf16.mxu1 %v2869_v24 }
  0x65   :  { %337 = vmatpush1.bf16.msra.mxu1 %v2867_v25 }
  0x66   :  { %338 = vmatprep.subr.bf16.mxu1 %v2872_v26 }
  0x69   :  { %339 = vmatpush1.bf16.msra.mxu1 %v2870_v27 }
  0x6a   :  { %340 = vmatprep.subr.bf16.mxu1 %v2875_v28 }
  0x6d   :  { %341 = vmatpush1.bf16.msra.mxu1 %v2873_v29 }
  0x6e   :  { %342 = vmatprep.subr.bf16.mxu1 %v2878_v30 }
  0x71   :  { %343 = vmatpush1.bf16.msra.mxu1 %v2876_v31 }
  0x72   :  { %344 = vmatprep.subr.bf16.mxu1 %v2881_v32 }
  0x75   :  { %345 = vmatpush1.bf16.msra.mxu1 %v2879_v33 }
  0x76   :  { %634 = vmatprep.subr.bf16.mxu1 %v3289_v35 }
  0x78   :  { %363 = vmatmul.mubr.bf16.vlgmr.msra.gmra.mrb[4].mxu1 %v2857_v18  ;;  %v112_v18 = vrot.slane %v3395_v10, %v111_v15 }
  0x79   :  { %666 = vmatprep.mubr.bf16.mxu1 %v3871_v0  ;;  %635 = vmatpush1.bf16.msra.mxu1 %v3291_v36 }
  0x7a   :  { %636 = vmatprep.subr.bf16.mxu1 %v3301_v39 }
  0x7d   :  { %637 = vmatpush1.bf16.msra.mxu1 %v3303_v40 }
  0x7e   :  { %638 = vmatprep.subr.bf16.mxu1 %v3311_v43 }
  0x81   :  { %639 = vmatpush1.bf16.msra.mxu1 %v3315_v44 }
  0x82   :  { %640 = vmatprep.subr.bf16.mxu1 %v3323_v47 }
  0x85   :  { %641 = vmatpush1.bf16.msra.mxu1 %v3327_v48 }
  0x86   :  { %642 = vmatprep.subr.bf16.mxu1 %v3335_v51 }
  0x89   :  { %643 = vmatpush1.bf16.msra.mxu1 %v3339_v52 }
  0x8a   :  { %644 = vmatprep.subr.bf16.mxu1 %v3347_v55 }
  0x8d   :  { %645 = vmatpush1.bf16.msra.mxu1 %v3351_v56 }
  0x8e   :  { %646 = vmatprep.subr.bf16.mxu1 %v3359_v59 }
  0x91   :  { %647 = vmatpush1.bf16.msra.mxu1 %v3363_v60 }
  0x92   :  { %648 = vmatprep.subr.bf16.mxu1 %v3371_v63 }
  0x95   :  { %649 = vmatpush1.bf16.msra.mxu1 %v3375_v1 }
  0x96   :  { %958 = vmatprep.subr.bf16.mxu1 %v3289_v35 }
 0x12b   :  { %v321_v3 = vpop.f32.mrb[0].mxu1 }
 0x12c   :  { %v3385_v4 = vpop.f32.mrb[1].mxu1  ;;  %v3398_v12 = vadd.f32 %v321_v3, %v104_v11 }
 0x12d   :  { %v325_v5 = vpop.f32.mrb[2].mxu1 }
 0x12e   :  { %v3387_v7 = vpop.f32.mrb[3].mxu1  ;;  %v3400_v13 = vadd.f32 %v325_v5, %v104_v11  ;;  %v373_v14 = vmul.f32 0.5, %v3398_v12 }
 0x130   :  { %v374_v16 = vmul.f32 0.5, %v3400_v13  ;;  %2986 = vtanh.f32 %v373_v14 }
 0x132   :  { %2988 = vtanh.f32 %v374_v16 }
 0x13a   :  { %v2987_v28 = vpop.eup %2986 }
 0x13b   :  { %v377_v32 = vmul.f32 0.5, %v2987_v28 }
 0x13c   :  { %v2989_v31 = vpop.eup %2988 }
 0x13d   :  { %v378_v33 = vmul.f32 0.5, %v2989_v31  ;;  %v379_v3 = vadd.f32 0.5, %v377_v32 }
 0x13f   :  { %v380_v6 = vadd.f32 0.5, %v378_v33 }
 0x14b   :  { %v364_v20 = vpop.f32.mrb[4].mxu1 }
 0x14c   :  { %v3408_v21 = vadd.f32 %v364_v20, %v112_v18  ;;  %v366_v22 = vpop.f32.mrb[5].mxu1 }
 0x14d   :  { %v3410_v23 = vadd.f32 %v366_v22, %v116_v19  ;;  %v368_v24 = vpop.f32.mrb[6].mxu1 }
 0x14e   :  { %2990 = vtanh.f32 %v3408_v21  ;;  %v3413_v25 = vadd.f32 %v368_v24, %v112_v18  ;;  %v370_v26 = vpop.f32.mrb[7].mxu1 }
 0x14f   :  { %v3415_v27 = vadd.f32 %v370_v26, %v116_v19  ;;  %v383_v29 = vmul.f32 0.5, %v3410_v23 }
 0x150   :  { %2992 = vtanh.f32 %v3413_v25 }
 0x151   :  { %v384_v30 = vmul.f32 0.5, %v3415_v27  ;;  %2994 = vtanh.f32 %v383_v29 }
 0x153   :  { %2996 = vtanh.f32 %v384_v30  ;;  %v107_v30 = vsub.s32 1, %v3389_v8 }
 0x155   :  { %v108_v31 = vrot.slane %v3395_v10, %v107_v30 }
 0x157   :  { %v3467_v32 = vadd.f32 %v3385_v4, %v108_v31 }
 0x158   :  { %v2991_v5 = vpop.eup %2990 }
 0x159   :  { %v3420_v9 = vmul.f32 %v2991_v5, %v379_v3 }
 0x15a   :  { %v2993_v11 = vpop.eup %2992 }
 0x15b   :  { %v3422_v14 = vmul.f32 %v2993_v11, %v380_v6  ;;  %2998 = vtanh.f32 %v3420_v9  ;;  %v2995_v15 = vpop.eup %2994 }
 0x15c   :  { %v387_v17 = vmul.f32 0.5, %v2995_v15  ;;  %v3471_v15 = vadd.f32 %v3387_v7, %v108_v31 }
 0x15d   :  { %3000 = vtanh.f32 %v3422_v14  ;;  %v2997_v16 = vpop.eup %2996 }
 0x15e   :  { %v388_v18 = vmul.f32 0.5, %v2997_v16  ;;  %v389_v20 = vadd.f32 0.5, %v387_v17 }
 0x160   :  { %v390_v22 = vadd.f32 0.5, %v388_v18 }
 0x165   :  { %v2999_v19 = vpop.eup %2998 }
 0x166   :  { %v395_v26 = vmul.f32 %v2999_v19, %v389_v20 }
 0x167   :  { %v3001_v24 = vpop.eup %3000 }
 0x168   :  { %v396_v28 = vmul.f32 %v3001_v24, %v390_v22 }
 0x16a   :  { %v3426_v29 = vpack.c.bf16 %v396_v28, %v395_v26 }
 0x16c   :  { %624 = vmatmul.mubr.bf16.vlgmr.msra.gmra.mrb[0].mxu0 %v3426_v29  ;;  %667 = vmatmul.mubr.bf16.vlgmr.msra.gmra.mrb[8].mxu1 %v3426_v29 }
 0x16d   :  { %916 = vmatpush1.bf16.msra.mxu0 %v3293_v37  ;;  %959 = vmatpush1.bf16.msra.mxu1 %v3291_v36 }
 0x16e   :  { %917 = vmatprep.subr.bf16.mxu0 %v3299_v38  ;;  %960 = vmatprep.subr.bf16.mxu1 %v3301_v39 }
 0x16f   :  { %947 = vmatprep.mubr.bf16.mxu0 %v3871_v0  ;;  %990 = vmatprep.mubr.bf16.mxu1 %v3871_v0 }
 0x171   :  { %918 = vmatpush1.bf16.msra.mxu0 %v3305_v41  ;;  %961 = vmatpush1.bf16.msra.mxu1 %v3303_v40 }
 0x172   :  { %919 = vmatprep.subr.bf16.mxu0 %v3309_v42  ;;  %962 = vmatprep.subr.bf16.mxu1 %v3311_v43 }
 0x175   :  { %920 = vmatpush1.bf16.msra.mxu0 %v3317_v45  ;;  %963 = vmatpush1.bf16.msra.mxu1 %v3315_v44 }
 0x176   :  { %921 = vmatprep.subr.bf16.mxu0 %v3321_v46  ;;  %964 = vmatprep.subr.bf16.mxu1 %v3323_v47 }
 0x179   :  { %922 = vmatpush1.bf16.msra.mxu0 %v3329_v49  ;;  %965 = vmatpush1.bf16.msra.mxu1 %v3327_v48 }
 0x17a   :  { %923 = vmatprep.subr.bf16.mxu0 %v3333_v50  ;;  %966 = vmatprep.subr.bf16.mxu1 %v3335_v51 }
 0x17d   :  { %924 = vmatpush1.bf16.msra.mxu0 %v3341_v53  ;;  %967 = vmatpush1.bf16.msra.mxu1 %v3339_v52 }
 0x17e   :  { %925 = vmatprep.subr.bf16.mxu0 %v3345_v54  ;;  %968 = vmatprep.subr.bf16.mxu1 %v3347_v55 }
 0x181   :  { %926 = vmatpush1.bf16.msra.mxu0 %v3353_v57  ;;  %969 = vmatpush1.bf16.msra.mxu1 %v3351_v56 }
 0x182   :  { %927 = vmatprep.subr.bf16.mxu0 %v3357_v58  ;;  %970 = vmatprep.subr.bf16.mxu1 %v3359_v59 }
 0x185   :  { %928 = vmatpush1.bf16.msra.mxu0 %v3365_v61  ;;  %971 = vmatpush1.bf16.msra.mxu1 %v3363_v60 }
 0x186   :  { %929 = vmatprep.subr.bf16.mxu0 %v3369_v62  ;;  %972 = vmatprep.subr.bf16.mxu1 %v3371_v63 }
 0x189   :  { %930 = vmatpush1.bf16.msra.mxu0 %v3377_v2  ;;  %973 = vmatpush1.bf16.msra.mxu1 %v3375_v1 }
 0x18a   :  { %1239 = vmatprep.subr.bf16.mxu0 %v3287_v34  ;;  %1282 = vmatprep.subr.bf16.mxu1 %v3289_v35 }
 0x23f   :  { %v625_v33 = vpop.f32.mrb[0].mxu0  ;;  %v668_v3 = vpop.f32.mrb[8].mxu1 }
 0x240   :  { %v677_v5 = vadd.f32 %v625_v33, %v3398_v12  ;;  %v627_v6 = vpop.f32.mrb[1].mxu0  ;;  %v670_v11 = vpop.f32.mrb[9].mxu1  ;;  %v679_v24 = vadd.f32 %v668_v3, %v3408_v21 }
 0x241   :  { %v678_v16 = vadd.f32 %v627_v6, %v3467_v32  ;;  %v629_v17 = vpop.f32.mrb[2].mxu0  ;;  %v672_v18 = vpop.f32.mrb[10].mxu1  ;;  %v680_v30 = vadd.f32 %v670_v11, %v3410_v23 }
 0x242   :  { %v685_v19 = vmul.f32 0.5, %v677_v5  ;;  %v681_v8 = vadd.f32 %v629_v17, %v3400_v13  ;;  %v631_v10 = vpop.f32.mrb[3].mxu0  ;;  %v674_v20 = vpop.f32.mrb[11].mxu1  ;;  %v683_v7 = vadd.f32 %v672_v18, %v3413_v25 }
 0x243   :  { %v693_v4 = vmul.f32 0.5, %v678_v16  ;;  %v682_v22 = vadd.f32 %v631_v10, %v3471_v15  ;;  %v684_v31 = vadd.f32 %v674_v20, %v3415_v27  ;;  %v703_v16 = vmul.f32 0.5, %v680_v30 }
 0x244   :  { %3002 = vtanh.f32 %v685_v19  ;;  %v686_v26 = vmul.f32 0.5, %v681_v8 }
 0x245   :  { %3004 = vtanh.f32 %v693_v4  ;;  %v694_v28 = vmul.f32 0.5, %v682_v22  ;;  %v704_v19 = vmul.f32 0.5, %v684_v31 }
 0x246   :  { %3006 = vtanh.f32 %v686_v26 }
 0x247   :  { %3008 = vtanh.f32 %v679_v24 }
 0x248   :  { %3010 = vtanh.f32 %v694_v28 }
 0x249   :  { %3012 = vtanh.f32 %v683_v7 }
 0x24a   :  { %3014 = vtanh.f32 %v703_v16 }
 0x24b   :  { %3016 = vtanh.f32 %v704_v19 }
 0x24e   :  { %v3003_v33 = vpop.eup %3002 }
 0x24f   :  { %v3005_v5 = vpop.eup %3004  ;;  %v689_v6 = vmul.f32 0.5, %v3003_v33 }
 0x250   :  { %v697_v17 = vmul.f32 0.5, %v3005_v5  ;;  %v3007_v3 = vpop.eup %3006 }
 0x251   :  { %v691_v8 = vadd.f32 0.5, %v689_v6  ;;  %v3009_v10 = vpop.eup %3008  ;;  %v690_v22 = vmul.f32 0.5, %v3007_v3 }
 0x252   :  { %v699_v4 = vadd.f32 0.5, %v697_v17  ;;  %v3011_v26 = vpop.eup %3010 }
 0x253   :  { %v713_v18 = vmul.f32 %v3009_v10, %v691_v8  ;;  %v692_v11 = vadd.f32 0.5, %v690_v22  ;;  %v698_v28 = vmul.f32 0.5, %v3011_v26  ;;  %v3013_v20 = vpop.eup %3012 }
 0x254   :  { %v711_v24 = vmul.f32 %v699_v4, %v3420_v9  ;;  %v3015_v6 = vpop.eup %3014 }
 0x255   :  { %v700_v33 = vadd.f32 0.5, %v698_v28  ;;  %v714_v30 = vmul.f32 %v3013_v20, %v692_v11  ;;  %v3017_v16 = vpop.eup %3016  ;;  %v707_v17 = vmul.f32 0.5, %v3015_v6 }
 0x256   :  { %v3481_v7 = vadd.f32 %v713_v18, %v711_v24  ;;  %v708_v9 = vmul.f32 0.5, %v3017_v16 }
 0x257   :  { %v712_v31 = vmul.f32 %v700_v33, %v3422_v14  ;;  %v709_v8 = vadd.f32 0.5, %v707_v17 }
 0x258   :  { %3018 = vtanh.f32 %v3481_v7  ;;  %v710_v19 = vadd.f32 0.5, %v708_v9 }
 0x259   :  { %v3485_v5 = vadd.f32 %v714_v30, %v712_v31 }
 0x25b   :  { %3020 = vtanh.f32 %v3485_v5 }
 0x262   :  { %v3019_v3 = vpop.eup %3018 }
 0x263   :  { %v719_v4 = vmul.f32 %v3019_v3, %v709_v8 }
 0x265   :  { %v3021_v10 = vpop.eup %3020 }
 0x266   :  { %v720_v22 = vmul.f32 %v3021_v10, %v710_v19 }
 0x268   :  { %v3488_v26 = vpack.c.bf16 %v720_v22, %v719_v4 }
 0x26a   :  { %948 = vmatmul.mubr.bf16.vlgmr.msra.gmra.mrb[4].mxu0 %v3488_v26  ;;  %991 = vmatmul.mubr.bf16.vlgmr.msra.gmra.mrb[12].mxu1 %v3488_v26 }
 0x26b   :  { %1240 = vmatpush1.bf16.msra.mxu0 %v3293_v37  ;;  %1283 = vmatpush1.bf16.msra.mxu1 %v3291_v36 }
 0x26c   :  { %1241 = vmatprep.subr.bf16.mxu0 %v3299_v38  ;;  %1284 = vmatprep.subr.bf16.mxu1 %v3301_v39 }
 0x26d   :  { %1271 = vmatprep.mubr.bf16.mxu0 %v3871_v0  ;;  %1314 = vmatprep.mubr.bf16.mxu1 %v3871_v0 }
 0x26f   :  { %1242 = vmatpush1.bf16.msra.mxu0 %v3305_v41  ;;  %1285 = vmatpush1.bf16.msra.mxu1 %v3303_v40 }
 0x270   :  { %1243 = vmatprep.subr.bf16.mxu0 %v3309_v42  ;;  %1286 = vmatprep.subr.bf16.mxu1 %v3311_v43 }
 0x273   :  { %1244 = vmatpush1.bf16.msra.mxu0 %v3317_v45  ;;  %1287 = vmatpush1.bf16.msra.mxu1 %v3315_v44 }
 0x274   :  { %1245 = vmatprep.subr.bf16.mxu0 %v3321_v46  ;;  %1288 = vmatprep.subr.bf16.mxu1 %v3323_v47 }
 0x277   :  { %1246 = vmatpush1.bf16.msra.mxu0 %v3329_v49  ;;  %1289 = vmatpush1.bf16.msra.mxu1 %v3327_v48 }
 0x278   :  { %1247 = vmatprep.subr.bf16.mxu0 %v3333_v50  ;;  %1290 = vmatprep.subr.bf16.mxu1 %v3335_v51 }
 0x27b   :  { %1248 = vmatpush1.bf16.msra.mxu0 %v3341_v53  ;;  %1291 = vmatpush1.bf16.msra.mxu1 %v3339_v52 }
 0x27c   :  { %1249 = vmatprep.subr.bf16.mxu0 %v3345_v54  ;;  %1292 = vmatprep.subr.bf16.mxu1 %v3347_v55 }
 0x27f   :  { %1250 = vmatpush1.bf16.msra.mxu0 %v3353_v57  ;;  %1293 = vmatpush1.bf16.msra.mxu1 %v3351_v56 }
 0x280   :  { %1251 = vmatprep.subr.bf16.mxu0 %v3357_v58  ;;  %1294 = vmatprep.subr.bf16.mxu1 %v3359_v59 }
 0x283   :  { %1252 = vmatpush1.bf16.msra.mxu0 %v3365_v61  ;;  %1295 = vmatpush1.bf16.msra.mxu1 %v3363_v60 }
 0x284   :  { %1253 = vmatprep.subr.bf16.mxu0 %v3369_v62  ;;  %1296 = vmatprep.subr.bf16.mxu1 %v3371_v63 }
 0x287   :  { %1254 = vmatpush1.bf16.msra.mxu0 %v3377_v2  ;;  %1297 = vmatpush1.bf16.msra.mxu1 %v3375_v1 }
 0x288   :  { %1563 = vmatprep.subr.bf16.mxu0 %v3287_v34  ;;  %1606 = vmatprep.subr.bf16.mxu1 %v3289_v35 }
 0x33d   :  { %v949_v14 = vpop.f32.mrb[4].mxu0  ;;  %v992_v18 = vpop.f32.mrb[12].mxu1 }
 0x33e   :  { %v1001_v24 = vadd.f32 %v949_v14, %v3398_v12  ;;  %v951_v11 = vpop.f32.mrb[5].mxu0  ;;  %v994_v28 = vpop.f32.mrb[13].mxu1  ;;  %v1003_v35 = vadd.f32 %v992_v18, %v3408_v21 }
 0x33f   :  { %v1002_v20 = vadd.f32 %v951_v11, %v3467_v32  ;;  %v953_v33 = vpop.f32.mrb[6].mxu0  ;;  %v996_v30 = vpop.f32.mrb[14].mxu1  ;;  %v1004_v10 = vadd.f32 %v994_v28, %v3410_v23 }
 0x340   :  { %v1009_v31 = vmul.f32 0.5, %v1001_v24  ;;  %v1005_v6 = vadd.f32 %v953_v33, %v3400_v13  ;;  %v955_v16 = vpop.f32.mrb[7].mxu0  ;;  %v998_v17 = vpop.f32.mrb[15].mxu1  ;;  %v1007_v19 = vadd.f32 %v996_v30, %v3413_v25 }
 0x341   :  { %v1017_v9 = vmul.f32 0.5, %v1002_v20  ;;  %v1006_v34 = vadd.f32 %v955_v16, %v3471_v15  ;;  %v1008_v4 = vadd.f32 %v998_v17, %v3415_v27  ;;  %v1027_v11 = vmul.f32 0.5, %v1004_v10 }
 0x342   :  { %3022 = vtanh.f32 %v1009_v31  ;;  %v1010_v3 = vmul.f32 0.5, %v1005_v6 }
 0x343   :  { %3024 = vtanh.f32 %v1017_v9  ;;  %v1018_v8 = vmul.f32 0.5, %v1006_v34  ;;  %v1028_v33 = vmul.f32 0.5, %v1008_v4 }
 0x344   :  { %3026 = vtanh.f32 %v1010_v3 }
 0x345   :  { %3028 = vtanh.f32 %v1003_v35 }
 0x346   :  { %3030 = vtanh.f32 %v1018_v8 }
 0x347   :  { %3032 = vtanh.f32 %v1007_v19 }
 0x348   :  { %3034 = vtanh.f32 %v1027_v11 }
 0x349   :  { %3036 = vtanh.f32 %v1028_v33 }
 0x34c   :  { %v3023_v22 = vpop.eup %3022 }
 0x34d   :  { %v3025_v14 = vpop.eup %3024  ;;  %v1013_v24 = vmul.f32 0.5, %v3023_v22 }
 0x34e   :  { %v1021_v20 = vmul.f32 0.5, %v3025_v14  ;;  %v3027_v18 = vpop.eup %3026 }
 0x34f   :  { %v1015_v31 = vadd.f32 0.5, %v1013_v24  ;;  %v3029_v6 = vpop.eup %3028  ;;  %v1014_v9 = vmul.f32 0.5, %v3027_v18 }
 0x350   :  { %v1023_v16 = vadd.f32 0.5, %v1021_v20  ;;  %v3031_v34 = vpop.eup %3030 }
 0x351   :  { %v1037_v30 = vmul.f32 %v3029_v6, %v1015_v31  ;;  %v1016_v28 = vadd.f32 0.5, %v1014_v9  ;;  %v1022_v3 = vmul.f32 0.5, %v3031_v34  ;;  %v3033_v17 = vpop.eup %3032 }
 0x352   :  { %v1035_v35 = vmul.f32 %v1023_v16, %v3481_v7  ;;  %v3035_v14 = vpop.eup %3034 }
 0x353   :  { %v1024_v19 = vadd.f32 0.5, %v1022_v3  ;;  %v1038_v10 = vmul.f32 %v3033_v17, %v1016_v28  ;;  %v3037_v24 = vpop.eup %3036  ;;  %v1031_v11 = vmul.f32 0.5, %v3035_v14 }
 0x354   :  { %v3535_v8 = vadd.f32 %v1037_v30, %v1035_v35  ;;  %v1032_v7 = vmul.f32 0.5, %v3037_v24 }
 0x355   :  { %v1036_v4 = vmul.f32 %v1024_v19, %v3485_v5  ;;  %v1033_v18 = vadd.f32 0.5, %v1031_v11 }
 0x356   :  { %3038 = vtanh.f32 %v3535_v8  ;;  %v1034_v33 = vadd.f32 0.5, %v1032_v7 }
 0x357   :  { %v3539_v22 = vadd.f32 %v1038_v10, %v1036_v4 }
 0x359   :  { %3040 = vtanh.f32 %v3539_v22 }
 0x360   :  { %v3039_v20 = vpop.eup %3038 }
 0x361   :  { %v1043_v6 = vmul.f32 %v3039_v20, %v1033_v18 }
 0x363   :  { %v3041_v31 = vpop.eup %3040 }
 0x364   :  { %v1044_v16 = vmul.f32 %v3041_v31, %v1034_v33 }
 0x366   :  { %v3542_v9 = vpack.c.bf16 %v1044_v16, %v1043_v6 }
 0x368   :  { %1272 = vmatmul.mubr.bf16.vlgmr.msra.gmra.mrb[8].mxu0 %v3542_v9  ;;  %1315 = vmatmul.mubr.bf16.vlgmr.msra.gmra.mrb[16].mxu1 %v3542_v9 }
 0x369   :  { %1564 = vmatpush1.bf16.msra.mxu0 %v3293_v37  ;;  %1607 = vmatpush1.bf16.msra.mxu1 %v3291_v36 }
 0x36a   :  { %1565 = vmatprep.subr.bf16.mxu0 %v3299_v38  ;;  %1608 = vmatprep.subr.bf16.mxu1 %v3301_v39 }
 0x36b   :  { %1595 = vmatprep.mubr.bf16.mxu0 %v3871_v0  ;;  %1638 = vmatprep.mubr.bf16.mxu1 %v3871_v0 }
 0x36d   :  { %1566 = vmatpush1.bf16.msra.mxu0 %v3305_v41  ;;  %1609 = vmatpush1.bf16.msra.mxu1 %v3303_v40 }
 0x36e   :  { %1567 = vmatprep.subr.bf16.mxu0 %v3309_v42  ;;  %1610 = vmatprep.subr.bf16.mxu1 %v3311_v43 }
 0x371   :  { %1568 = vmatpush1.bf16.msra.mxu0 %v3317_v45  ;;  %1611 = vmatpush1.bf16.msra.mxu1 %v3315_v44 }
 0x372   :  { %1569 = vmatprep.subr.bf16.mxu0 %v3321_v46  ;;  %1612 = vmatprep.subr.bf16.mxu1 %v3323_v47 }
 0x375   :  { %1570 = vmatpush1.bf16.msra.mxu0 %v3329_v49  ;;  %1613 = vmatpush1.bf16.msra.mxu1 %v3327_v48 }
 0x376   :  { %1571 = vmatprep.subr.bf16.mxu0 %v3333_v50  ;;  %1614 = vmatprep.subr.bf16.mxu1 %v3335_v51 }
 0x379   :  { %1572 = vmatpush1.bf16.msra.mxu0 %v3341_v53  ;;  %1615 = vmatpush1.bf16.msra.mxu1 %v3339_v52 }
 0x37a   :  { %1573 = vmatprep.subr.bf16.mxu0 %v3345_v54  ;;  %1616 = vmatprep.subr.bf16.mxu1 %v3347_v55 }
 0x37d   :  { %1574 = vmatpush1.bf16.msra.mxu0 %v3353_v57  ;;  %1617 = vmatpush1.bf16.msra.mxu1 %v3351_v56 }
 0x37e   :  { %1575 = vmatprep.subr.bf16.mxu0 %v3357_v58  ;;  %1618 = vmatprep.subr.bf16.mxu1 %v3359_v59 }
 0x381   :  { %1576 = vmatpush1.bf16.msra.mxu0 %v3365_v61  ;;  %1619 = vmatpush1.bf16.msra.mxu1 %v3363_v60 }
 0x382   :  { %1577 = vmatprep.subr.bf16.mxu0 %v3369_v62  ;;  %1620 = vmatprep.subr.bf16.mxu1 %v3371_v63 }
 0x385   :  { %1578 = vmatpush1.bf16.msra.mxu0 %v3377_v2  ;;  %1621 = vmatpush1.bf16.msra.mxu1 %v3375_v1 }
 0x43b   :  { %v1273_v36 = vpop.f32.mrb[8].mxu0  ;;  %v1316_v37 = vpop.f32.mrb[16].mxu1 }
 0x43c   :  { %v1325_v38 = vadd.f32 %v1273_v36, %v3398_v12  ;;  %v1275_v39 = vpop.f32.mrb[9].mxu0  ;;  %v1318_v40 = vpop.f32.mrb[17].mxu1  ;;  %v1327_v50 = vadd.f32 %v1316_v37, %v3408_v21 }
 0x43d   :  { %v1326_v41 = vadd.f32 %v1275_v39, %v3467_v32  ;;  %v1277_v42 = vpop.f32.mrb[10].mxu0  ;;  %v1320_v43 = vpop.f32.mrb[18].mxu1  ;;  %v1328_v54 = vadd.f32 %v1318_v40, %v3410_v23  ;;  %v3604_v39 = vld [vmem:[#allocation5] ss:$16 sps:$4 sm:$0xff]   ;;  %v3606_v40 = vld [vmem:[#allocation5 + $0x8] ss:$16 sps:$4 sm:$0xff]  }
 0x43e   :  { %v1333_v44 = vmul.f32 0.5, %v1325_v38  ;;  %v1329_v45 = vadd.f32 %v1277_v42, %v3400_v13  ;;  %v1279_v46 = vpop.f32.mrb[11].mxu0  ;;  %v1322_v47 = vpop.f32.mrb[19].mxu1  ;;  %v1331_v53 = vadd.f32 %v1320_v43, %v3413_v25  ;;  %v3602_v38 = vld [vmem:[#allocation5 + $0xc] ss:$16 sps:$4 sm:$0xff]  }
 0x43f   :  { %v1341_v48 = vmul.f32 0.5, %v1326_v41  ;;  %v1330_v49 = vadd.f32 %v1279_v46, %v3471_v15  ;;  %v1332_v55 = vadd.f32 %v1322_v47, %v3415_v27  ;;  %v1351_v59 = vmul.f32 0.5, %v1328_v54  ;;  %1930 = vmatprep.subr.bf16.mxu1 %v3602_v38  ;;  %v3612_v41 = vld [vmem:[#allocation5 + $0x24] ss:$16 sps:$4 sm:$0xff]   ;;  %v3614_v42 = vld [vmem:[#allocation5 + $0x2c] ss:$16 sps:$4 sm:$0xff]  }
 0x440   :  { %3042 = vtanh.f32 %v1333_v44  ;;  %v1334_v51 = vmul.f32 0.5, %v1329_v45  ;;  %v3616_v43 = vld [vmem:[#allocation5 + $0x20] ss:$16 sps:$4 sm:$0xff]   ;;  %v3618_v44 = vld [vmem:[#allocation5 + $0x28] ss:$16 sps:$4 sm:$0xff]  }
 0x441   :  { %3044 = vtanh.f32 %v1341_v48  ;;  %v1342_v52 = vmul.f32 0.5, %v1330_v49  ;;  %v1352_v61 = vmul.f32 0.5, %v1332_v55  ;;  %v3624_v45 = vld [vmem:[#allocation5 + $0x44] ss:$16 sps:$4 sm:$0xff]   ;;  %v3626_v46 = vld [vmem:[#allocation5 + $0x4c] ss:$16 sps:$4 sm:$0xff]  }
 0x442   :  { %3046 = vtanh.f32 %v1334_v51  ;;  %v3628_v47 = vld [vmem:[#allocation5 + $0x40] ss:$16 sps:$4 sm:$0xff]   ;;  %v3630_v48 = vld [vmem:[#allocation5 + $0x48] ss:$16 sps:$4 sm:$0xff]   ;;  %v3636_v49 = vld [vmem:[#allocation5 + $0x64] ss:$16 sps:$4 sm:$0xff]  }
 0x443   :  { %3048 = vtanh.f32 %v1327_v50  ;;  %v3638_v50 = vld [vmem:[#allocation5 + $0x6c] ss:$16 sps:$4 sm:$0xff]   ;;  %v3640_v51 = vld [vmem:[#allocation5 + $0x60] ss:$16 sps:$4 sm:$0xff]  }
 0x444   :  { %3050 = vtanh.f32 %v1342_v52  ;;  %v3642_v52 = vld [vmem:[#allocation5 + $0x68] ss:$16 sps:$4 sm:$0xff]   ;;  %v3650_v54 = vld [vmem:[#allocation5 + $0x8c] ss:$16 sps:$4 sm:$0xff]   ;;  %v3652_v55 = vld [vmem:[#allocation5 + $0x80] ss:$16 sps:$4 sm:$0xff]  }
 0x445   :  { %3052 = vtanh.f32 %v1331_v53  ;;  %v3648_v53 = vld [vmem:[#allocation5 + $0x84] ss:$16 sps:$4 sm:$0xff]  }
 0x446   :  { %3054 = vtanh.f32 %v1351_v59  ;;  %v3664_v59 = vld [vmem:[#allocation5 + $0xa0] ss:$16 sps:$4 sm:$0xff]  }
 0x447   :  { %3056 = vtanh.f32 %v1352_v61  ;;  %v3672_v61 = vld [vmem:[#allocation5 + $0xc4] ss:$16 sps:$4 sm:$0xff]  }
 0x44a   :  { %v3043_v56 = vpop.eup %3042 }
 0x44b   :  { %v3045_v57 = vpop.eup %3044  ;;  %v1337_v58 = vmul.f32 0.5, %v3043_v56  ;;  %v3654_v56 = vld [vmem:[#allocation5 + $0x88] ss:$16 sps:$4 sm:$0xff]  }
 0x44c   :  { %v1345_v60 = vmul.f32 0.5, %v3045_v57  ;;  %v3047_v62 = vpop.eup %3046  ;;  %v3660_v57 = vld [vmem:[#allocation5 + $0xa4] ss:$16 sps:$4 sm:$0xff]  }
 0x44d   :  { %v1339_v63 = vadd.f32 0.5, %v1337_v58  ;;  %v3049_v1 = vpop.eup %3048  ;;  %v1338_v5 = vmul.f32 0.5, %v3047_v62  ;;  %v3662_v58 = vld [vmem:[#allocation5 + $0xac] ss:$16 sps:$4 sm:$0xff]  }
 0x44e   :  { %v1347_v2 = vadd.f32 0.5, %v1345_v60  ;;  %v3051_v34 = vpop.eup %3050  ;;  %v3666_v60 = vld [vmem:[#allocation5 + $0xa8] ss:$16 sps:$4 sm:$0xff]   ;;  %v3674_v62 = vld [vmem:[#allocation5 + $0xcc] ss:$16 sps:$4 sm:$0xff]  }
 0x44f   :  { %v1361_v30 = vmul.f32 %v3049_v1, %v1339_v63  ;;  %v1340_v28 = vadd.f32 0.5, %v1338_v5  ;;  %v1346_v3 = vmul.f32 0.5, %v3051_v34  ;;  %v3053_v17 = vpop.eup %3052  ;;  %v3676_v63 = vld [vmem:[#allocation5 + $0xc0] ss:$16 sps:$4 sm:$0xff]   ;;  %v3678_v1 = vld [vmem:[#allocation5 + $0xc8] ss:$16 sps:$4 sm:$0xff]  }
 0x450   :  { %v1359_v35 = vmul.f32 %v1347_v2, %v3535_v8  ;;  %v3055_v11 = vpop.eup %3054  ;;  %v3684_v2 = vld [vmem:[#allocation5 + $0xe0] ss:$16 sps:$4 sm:$0xff]   ;;  %v3686_v5 = vld [vmem:[#allocation5 + $0xe4] ss:$16 sps:$4 sm:$0xff]   ;;  %v3688_v34 = vld [vmem:[#allocation5 + $0xe8] ss:$16 sps:$4 sm:$0xff]  }
 0x451   :  { %v1348_v10 = vadd.f32 0.5, %v1346_v3  ;;  %v1362_v4 = vmul.f32 %v3053_v17, %v1340_v28  ;;  %v3057_v7 = vpop.eup %3056  ;;  %v1355_v20 = vmul.f32 0.5, %v3055_v11 }
 0x452   :  { %v3587_v19 = vadd.f32 %v1361_v30, %v1359_v35  ;;  %v1356_v8 = vmul.f32 0.5, %v3057_v7  ;;  %v3690_v30 = vld [vmem:[#allocation5 + $0xec] ss:$16 sps:$4 sm:$0xff]  }
 0x453   :  { %v1360_v14 = vmul.f32 %v1348_v10, %v3539_v22  ;;  %v1357_v33 = vadd.f32 0.5, %v1355_v20  ;;  %v3600_v22 = vld [vmem:[#allocation5 + $0x4] ss:$16 sps:$4 sm:$0xff]  }
 0x454   :  { %3058 = vtanh.f32 %v3587_v19  ;;  %v1358_v31 = vadd.f32 0.5, %v1356_v8  ;;  %1887 = vmatprep.subr.bf16.mxu0 %v3600_v22 }
 0x455   :  { %v3591_v24 = vadd.f32 %v1362_v4, %v1360_v14 }
 0x457   :  { %3060 = vtanh.f32 %v3591_v24 }
 0x45e   :  { %v3059_v18 = vpop.eup %3058 }
 0x45f   :  { %v1367_v16 = vmul.f32 %v3059_v18, %v1357_v33 }
 0x461   :  { %v3061_v6 = vpop.eup %3060 }
 0x462   :  { %v1368_v36 = vmul.f32 %v3061_v6, %v1358_v31 }
 0x464   :  { %v3594_v37 = vpack.c.bf16 %v1368_v36, %v1367_v16 }
 0x466   :  { %1596 = vmatmul.mubr.bf16.vlgmr.msra.gmra.mrb[12].mxu0 %v3594_v37  ;;  %1639 = vmatmul.mubr.bf16.vlgmr.msra.gmra.mrb[20].mxu1 %v3594_v37 }
 0x467   :  { %1919 = vmatprep.mubr.bf16.mxu0 %v3871_v0  ;;  %1962 = vmatprep.mubr.bf16.mxu1 %v3871_v0 }
 0x468   :  { %1888 = vmatpush1.bf16.msra.mxu0 %v3604_v39  ;;  %1931 = vmatpush1.bf16.msra.mxu1 %v3606_v40 }
 0x469   :  { %1889 = vmatprep.subr.bf16.mxu0 %v3612_v41  ;;  %1932 = vmatprep.subr.bf16.mxu1 %v3614_v42 }
 0x46c   :  { %1890 = vmatpush1.bf16.msra.mxu0 %v3616_v43  ;;  %1933 = vmatpush1.bf16.msra.mxu1 %v3618_v44 }
 0x46d   :  { %1891 = vmatprep.subr.bf16.mxu0 %v3624_v45  ;;  %1934 = vmatprep.subr.bf16.mxu1 %v3626_v46 }
 0x470   :  { %1892 = vmatpush1.bf16.msra.mxu0 %v3628_v47  ;;  %1935 = vmatpush1.bf16.msra.mxu1 %v3630_v48 }
 0x471   :  { %1893 = vmatprep.subr.bf16.mxu0 %v3636_v49  ;;  %1936 = vmatprep.subr.bf16.mxu1 %v3638_v50 }
 0x474   :  { %1894 = vmatpush1.bf16.msra.mxu0 %v3640_v51  ;;  %1937 = vmatpush1.bf16.msra.mxu1 %v3642_v52 }
 0x475   :  { %1895 = vmatprep.subr.bf16.mxu0 %v3648_v53  ;;  %1938 = vmatprep.subr.bf16.mxu1 %v3650_v54 }
 0x478   :  { %1896 = vmatpush1.bf16.msra.mxu0 %v3652_v55  ;;  %1939 = vmatpush1.bf16.msra.mxu1 %v3654_v56 }
 0x479   :  { %1897 = vmatprep.subr.bf16.mxu0 %v3660_v57  ;;  %1940 = vmatprep.subr.bf16.mxu1 %v3662_v58 }
 0x47c   :  { %1898 = vmatpush1.bf16.msra.mxu0 %v3664_v59  ;;  %1941 = vmatpush1.bf16.msra.mxu1 %v3666_v60 }
 0x47d   :  { %1899 = vmatprep.subr.bf16.mxu0 %v3672_v61  ;;  %1942 = vmatprep.subr.bf16.mxu1 %v3674_v62 }
 0x480   :  { %1900 = vmatpush1.bf16.msra.mxu0 %v3676_v63  ;;  %1943 = vmatpush1.bf16.msra.mxu1 %v3678_v1 }
 0x481   :  { %1901 = vmatprep.subr.bf16.mxu0 %v3686_v5  ;;  %1944 = vmatprep.subr.bf16.mxu1 %v3690_v30 }
 0x484   :  { %1902 = vmatpush1.bf16.msra.mxu0 %v3684_v2  ;;  %1945 = vmatpush1.bf16.msra.mxu1 %v3688_v34 }
 0x485   :  { %2211 = vmatprep.subr.bf16.mxu0 %v3600_v22  ;;  %2254 = vmatprep.subr.bf16.mxu1 %v3602_v38 }
 0x539   :  { %v1597_v35 = vpop.f32.mrb[12].mxu0  ;;  %v1640_v28 = vpop.f32.mrb[20].mxu1 }
 0x53a   :  { %v1649_v3 = vadd.f32 %v1597_v35, %v3398_v12  ;;  %v1599_v17 = vpop.f32.mrb[13].mxu0  ;;  %v1642_v10 = vpop.f32.mrb[21].mxu1  ;;  %v1651_v6 = vadd.f32 %v1640_v28, %v3408_v21 }
 0x53b   :  { %v1650_v4 = vadd.f32 %v1599_v17, %v3467_v32  ;;  %v1601_v14 = vpop.f32.mrb[14].mxu0  ;;  %v1644_v11 = vpop.f32.mrb[22].mxu1  ;;  %v1652_v38 = vadd.f32 %v1642_v10, %v3410_v23 }
 0x53c   :  { %v1657_v7 = vmul.f32 0.5, %v1649_v3  ;;  %v1653_v20 = vadd.f32 %v1601_v14, %v3400_v13  ;;  %v1603_v8 = vpop.f32.mrb[15].mxu0  ;;  %v1646_v18 = vpop.f32.mrb[23].mxu1  ;;  %v1655_v22 = vadd.f32 %v1644_v11, %v3413_v25 }
 0x53d   :  { %v1665_v33 = vmul.f32 0.5, %v1650_v4  ;;  %v1654_v31 = vadd.f32 %v1603_v8, %v3471_v15  ;;  %v1656_v35 = vadd.f32 %v1646_v18, %v3415_v27  ;;  %v1675_v14 = vmul.f32 0.5, %v1652_v38 }
 0x53e   :  { %3062 = vtanh.f32 %v1657_v7  ;;  %v1658_v16 = vmul.f32 0.5, %v1653_v20 }
 0x53f   :  { %3064 = vtanh.f32 %v1665_v33  ;;  %v1666_v36 = vmul.f32 0.5, %v1654_v31  ;;  %v1676_v8 = vmul.f32 0.5, %v1656_v35 }
 0x540   :  { %3066 = vtanh.f32 %v1658_v16 }
 0x541   :  { %3068 = vtanh.f32 %v1651_v6 }
 0x542   :  { %3070 = vtanh.f32 %v1666_v36 }
 0x543   :  { %3072 = vtanh.f32 %v1655_v22 }
 0x544   :  { %3074 = vtanh.f32 %v1675_v14 }
 0x545   :  { %3076 = vtanh.f32 %v1676_v8 }
 0x548   :  { %v3063_v3 = vpop.eup %3062 }
 0x549   :  { %v3065_v17 = vpop.eup %3064  ;;  %v1661_v4 = vmul.f32 0.5, %v3063_v3 }
 0x54a   :  { %v1669_v7 = vmul.f32 0.5, %v3065_v17  ;;  %v3067_v28 = vpop.eup %3066 }
 0x54b   :  { %v1663_v20 = vadd.f32 0.5, %v1661_v4  ;;  %v3069_v33 = vpop.eup %3068  ;;  %v1662_v16 = vmul.f32 0.5, %v3067_v28 }
 0x54c   :  { %v1671_v31 = vadd.f32 0.5, %v1669_v7  ;;  %v3071_v0 = vpop.eup %3070 }
 0x54d   :  { %v1685_v11 = vmul.f32 %v3069_v33, %v1663_v20  ;;  %v1664_v10 = vadd.f32 0.5, %v1662_v16  ;;  %v1670_v36 = vmul.f32 0.5, %v3071_v0  ;;  %v3073_v18 = vpop.eup %3072 }
 0x54e   :  { %v1683_v6 = vmul.f32 %v1671_v31, %v3587_v19  ;;  %v3075_v4 = vpop.eup %3074 }
 0x54f   :  { %v1672_v3 = vadd.f32 0.5, %v1670_v36  ;;  %v1686_v38 = vmul.f32 %v3073_v18, %v1664_v10  ;;  %v3077_v14 = vpop.eup %3076  ;;  %v1679_v7 = vmul.f32 0.5, %v3075_v4 }
 0x550   :  { %v3707_v22 = vadd.f32 %v1685_v11, %v1683_v6  ;;  %v1680_v19 = vmul.f32 0.5, %v3077_v14 }
 0x551   :  { %v1684_v35 = vmul.f32 %v1672_v3, %v3591_v24  ;;  %v1681_v0 = vadd.f32 0.5, %v1679_v7  ;;  %v3873_v24 = vmov 0  }
 0x552   :  { %3078 = vtanh.f32 %v3707_v22  ;;  %v1682_v8 = vadd.f32 0.5, %v1680_v19 }
 0x553   :  { %v3711_v17 = vadd.f32 %v1686_v38, %v1684_v35 }
 0x555   :  { %3080 = vtanh.f32 %v3711_v17 }
 0x55c   :  { %v3079_v28 = vpop.eup %3078 }
 0x55d   :  { %v1691_v33 = vmul.f32 %v3079_v28, %v1681_v0 }
 0x55f   :  { %v3081_v20 = vpop.eup %3080 }
 0x560   :  { %v1692_v31 = vmul.f32 %v3081_v20, %v1682_v8 }
 0x562   :  { %v3714_v16 = vpack.c.bf16 %v1692_v31, %v1691_v33 }
 0x564   :  { %1920 = vmatmul.mubr.bf16.vlgmr.msra.gmra.mrb[16].mxu0 %v3714_v16  ;;  %1963 = vmatmul.mubr.bf16.vlgmr.msra.gmra.mrb[24].mxu1 %v3714_v16 }
 0x565   :  { %2212 = vmatpush1.bf16.msra.mxu0 %v3604_v39  ;;  %2255 = vmatpush1.bf16.msra.mxu1 %v3606_v40  ;;  %v3200_v39 = vmov 0.0  }
 0x566   :  { %2213 = vmatprep.subr.bf16.mxu0 %v3612_v41  ;;  %2256 = vmatprep.subr.bf16.mxu1 %v3614_v42 }
 0x567   :  { %2243 = vmatprep.mubr.bf16.mxu0 %v3873_v24  ;;  %2286 = vmatprep.mubr.bf16.mxu1 %v3873_v24 }
 0x569   :  { %2214 = vmatpush1.bf16.msra.mxu0 %v3616_v43  ;;  %2257 = vmatpush1.bf16.msra.mxu1 %v3618_v44 }
 0x56a   :  { %2215 = vmatprep.subr.bf16.mxu0 %v3624_v45  ;;  %2258 = vmatprep.subr.bf16.mxu1 %v3626_v46 }
 0x56d   :  { %2216 = vmatpush1.bf16.msra.mxu0 %v3628_v47  ;;  %2259 = vmatpush1.bf16.msra.mxu1 %v3630_v48 }
 0x56e   :  { %2217 = vmatprep.subr.bf16.mxu0 %v3636_v49  ;;  %2260 = vmatprep.subr.bf16.mxu1 %v3638_v50 }
 0x571   :  { %2218 = vmatpush1.bf16.msra.mxu0 %v3640_v51  ;;  %2261 = vmatpush1.bf16.msra.mxu1 %v3642_v52 }
 0x572   :  { %2219 = vmatprep.subr.bf16.mxu0 %v3648_v53  ;;  %2262 = vmatprep.subr.bf16.mxu1 %v3650_v54 }
 0x575   :  { %2220 = vmatpush1.bf16.msra.mxu0 %v3652_v55  ;;  %2263 = vmatpush1.bf16.msra.mxu1 %v3654_v56 }
 0x576   :  { %2221 = vmatprep.subr.bf16.mxu0 %v3660_v57  ;;  %2264 = vmatprep.subr.bf16.mxu1 %v3662_v58 }
 0x579   :  { %2222 = vmatpush1.bf16.msra.mxu0 %v3664_v59  ;;  %2265 = vmatpush1.bf16.msra.mxu1 %v3666_v60 }
 0x57a   :  { %2223 = vmatprep.subr.bf16.mxu0 %v3672_v61  ;;  %2266 = vmatprep.subr.bf16.mxu1 %v3674_v62 }
 0x57d   :  { %2224 = vmatpush1.bf16.msra.mxu0 %v3676_v63  ;;  %2267 = vmatpush1.bf16.msra.mxu1 %v3678_v1 }
 0x57e   :  { %2225 = vmatprep.subr.bf16.mxu0 %v3686_v5  ;;  %2268 = vmatprep.subr.bf16.mxu1 %v3690_v30 }
 0x581   :  { %2226 = vmatpush1.bf16.msra.mxu0 %v3684_v2  ;;  %2269 = vmatpush1.bf16.msra.mxu1 %v3688_v34 }
 0x582   :  { %2779 = vmatprep.subr.bf16.mxu0 %v3200_v39 }
 0x637   :  { %v1921_v40 = vpop.f32.mrb[16].mxu0  ;;  %v1964_v41 = vpop.f32.mrb[24].mxu1 }
 0x638   :  { %v1973_v42 = vadd.f32 %v1921_v40, %v3398_v12  ;;  %v1923_v43 = vpop.f32.mrb[17].mxu0  ;;  %v1966_v44 = vpop.f32.mrb[25].mxu1  ;;  %v1975_v54 = vadd.f32 %v1964_v41, %v3408_v21 }
 0x639   :  { %v1974_v45 = vadd.f32 %v1923_v43, %v3467_v32  ;;  %v1925_v46 = vpop.f32.mrb[18].mxu0  ;;  %v1968_v47 = vpop.f32.mrb[26].mxu1  ;;  %v1976_v58 = vadd.f32 %v1966_v44, %v3410_v23  ;;  %v2978_v43 = vld [vmem:[#allocation7] sm:$0xff]  }
 0x63a   :  { %v1981_v48 = vmul.f32 0.5, %v1973_v42  ;;  %v1977_v49 = vadd.f32 %v1925_v46, %v3400_v13  ;;  %v1927_v50 = vpop.f32.mrb[19].mxu0  ;;  %v1970_v51 = vpop.f32.mrb[27].mxu1  ;;  %v1979_v57 = vadd.f32 %v1968_v47, %v3413_v25  ;;  %v2981_v46 = vld [vmem:[#allocation7 + $0x18] sm:$0xff]   ;;  %v2982_v47 = vld [vmem:[#allocation7 + $0x20] sm:$0xff]  }
 0x63b   :  { %v1989_v52 = vmul.f32 0.5, %v1974_v45  ;;  %v1978_v53 = vadd.f32 %v1927_v50, %v3471_v15  ;;  %v1980_v59 = vadd.f32 %v1970_v51, %v3415_v27  ;;  %v1999_v63 = vmul.f32 0.5, %v1976_v58  ;;  %v2980_v45 = vld [vmem:[#allocation7 + $0x10] sm:$0xff]   ;;  %v2985_v50 = vld [vmem:[#allocation7 + $0x38] sm:$0xff]  }
 0x63c   :  { %3082 = vtanh.f32 %v1981_v48  ;;  %v1982_v55 = vmul.f32 0.5, %v1977_v49  ;;  %v2983_v48 = vld [vmem:[#allocation7 + $0x28] sm:$0xff]   ;;  %v2984_v49 = vld [vmem:[#allocation7 + $0x30] sm:$0xff]  }
 0x63d   :  { %3084 = vtanh.f32 %v1989_v52  ;;  %v1990_v56 = vmul.f32 0.5, %v1978_v53  ;;  %v2000_v2 = vmul.f32 0.5, %v1980_v59 }
 0x63e   :  { %3086 = vtanh.f32 %v1982_v55 }
 0x63f   :  { %3088 = vtanh.f32 %v1975_v54 }
 0x640   :  { %3090 = vtanh.f32 %v1990_v56 }
 0x641   :  { %3092 = vtanh.f32 %v1979_v57 }
 0x642   :  { %3094 = vtanh.f32 %v1999_v63 }
 0x643   :  { %3096 = vtanh.f32 %v2000_v2 }
 0x646   :  { %v3083_v60 = vpop.eup %3082 }
 0x647   :  { %v3085_v61 = vpop.eup %3084  ;;  %v1985_v62 = vmul.f32 0.5, %v3083_v60 }
 0x648   :  { %v1993_v1 = vmul.f32 0.5, %v3085_v61  ;;  %v3087_v5 = vpop.eup %3086 }
 0x649   :  { %v1987_v34 = vadd.f32 0.5, %v1985_v62  ;;  %v3089_v30 = vpop.eup %3088  ;;  %v1986_v6 = vmul.f32 0.5, %v3087_v5 }
 0x64a   :  { %v1995_v11 = vadd.f32 0.5, %v1993_v1  ;;  %v3091_v10 = vpop.eup %3090 }
 0x64b   :  { %v2009_v36 = vmul.f32 %v3089_v30, %v1987_v34  ;;  %v1988_v3 = vadd.f32 0.5, %v1986_v6  ;;  %v1994_v38 = vmul.f32 0.5, %v3091_v10  ;;  %v3093_v35 = vpop.eup %3092 }
 0x64c   :  { %v2007_v18 = vmul.f32 %v1995_v11, %v3707_v22  ;;  %v3095_v0 = vpop.eup %3094 }
 0x64d   :  { %v1996_v14 = vadd.f32 0.5, %v1994_v38  ;;  %v2010_v7 = vmul.f32 %v3093_v35, %v1988_v3  ;;  %v3097_v8 = vpop.eup %3096  ;;  %v2003_v20 = vmul.f32 0.5, %v3095_v0 }
 0x64e   :  { %v3760_v4 = vadd.f32 %v2009_v36, %v2007_v18  ;;  %v2004_v22 = vmul.f32 0.5, %v3097_v8  ;;  %v3806_v8 = vld [vmem:[%s3869_s5] ss:$0 sm:$0xff] }
 0x64f   :  { %v2008_v19 = vmul.f32 %v1996_v14, %v3711_v17  ;;  %v2005_v31 = vadd.f32 0.5, %v2003_v20  ;;  %v2979_v17 = vld [vmem:[#allocation7 + $0x8] sm:$0xff]  }
 0x650   :  { %3098 = vtanh.f32 %v3760_v4  ;;  %v2006_v24 = vadd.f32 0.5, %v2004_v22 }
 0x651   :  { %v3764_v28 = vadd.f32 %v2010_v7, %v2008_v19 }
 0x653   :  { %3100 = vtanh.f32 %v3764_v28 }
 0x65a   :  { %v3099_v33 = vpop.eup %3098 }
 0x65b   :  { %v2015_v41 = vmul.f32 %v3099_v33, %v2005_v31 }
 0x65d   :  { %v3101_v40 = vpop.eup %3100 }
 0x65e   :  { %v2016_v42 = vmul.f32 %v3101_v40, %v2006_v24 }
 0x660   :  { %v2017_v44 = vpack.c.bf16 %v2016_v42, %v2015_v41 }
 0x662   :  { %2244 = vmatmul.mubr.bf16.vlgmr.msra.gmra.mrb[20].mxu0 %v2017_v44  ;;  %2287 = vmatmul.mubr.bf16.vlgmr.msra.gmra.mrb[28].mxu1 %v2017_v44 }
 0x663   :  { %2780 = vmatpush3.bf16.msra.mxu0 %v2978_v43  ;;  %2795 = vmatprep.mubr.msk.bf16.mxu0 %vm3201_vm0, %v3200_v39 }
 0x664   :  { %2781 = vmatprep.subr.bf16.mxu0 %v3200_v39 }
 0x667   :  { %2782 = vmatpush3.bf16.msra.mxu0 %v2979_v17 }
 0x668   :  { %2783 = vmatprep.subr.bf16.mxu0 %v3200_v39 }
 0x66b   :  { %2784 = vmatpush3.bf16.msra.mxu0 %v2980_v45 }
 0x66c   :  { %2785 = vmatprep.subr.bf16.mxu0 %v3200_v39 }
 0x66f   :  { %2786 = vmatpush3.bf16.msra.mxu0 %v2981_v46 }
 0x670   :  { %2787 = vmatprep.subr.bf16.mxu0 %v3200_v39 }
 0x673   :  { %2788 = vmatpush3.bf16.msra.mxu0 %v2982_v47 }
 0x674   :  { %2789 = vmatprep.subr.bf16.mxu0 %v3200_v39 }
 0x677   :  { %2790 = vmatpush3.bf16.msra.mxu0 %v2983_v48 }
 0x678   :  { %2791 = vmatprep.subr.bf16.mxu0 %v3200_v39 }
 0x67b   :  { %2792 = vmatpush3.bf16.msra.mxu0 %v2984_v49 }
 0x67c   :  { %2793 = vmatprep.subr.bf16.mxu0 %v3200_v39 }
 0x67f   :  { %2794 = vmatpush3.bf16.msra.mxu0 %v2985_v50 }
 0x682   :  { %2796 = vmatmul.mubr.bf16.vlgmr.msra.gmra.mrb[24].mxu0 %v3426_v29 }
 0x683   :  { %2799 = vmatprep.mubr.msk.bf16.mxu0 %vm3201_vm0, %v3200_v39 }
 0x68a   :  { %2800 = vmatmul.mubr.bf16.gmra.mrb[28].mxu0 %v3488_v26 }
 0x68b   :  { %2803 = vmatprep.mubr.msk.bf16.mxu0 %vm3201_vm0, %v3200_v39 }
 0x692   :  { %2804 = vmatmul.mubr.bf16.gmra.mrb[32].mxu0 %v3542_v9 }
 0x693   :  { %2807 = vmatprep.mubr.msk.bf16.mxu0 %vm3201_vm0, %v3200_v39 }
 0x69a   :  { %2808 = vmatmul.mubr.bf16.gmra.mrb[36].mxu0 %v3594_v37 }
 0x69b   :  { %2811 = vmatprep.mubr.msk.bf16.mxu0 %vm3201_vm0, %v3200_v39 }
 0x6a2   :  { %2812 = vmatmul.mubr.bf16.gmra.mrb[40].mxu0 %v3714_v16 }
 0x6a3   :  { %2815 = vmatprep.mubr.msk.bf16.mxu0 %vm3201_vm0, %v3200_v39 }
 0x6aa   :  { %2816 = vmatmul.mubr.bf16.gmra.mrb[44].mxu0 %v2017_v44 }
 0x6ab   :  { %2819 = vmatprep.mubr.msk.bf16.mxu0 %vm3201_vm0, %v3200_v39 }
 0x735   :  { %v2245_v29 = vpop.f32.mrb[20].mxu0  ;;  %v2288_v26 = vpop.f32.mrb[28].mxu1 }
 0x736   :  { %v2297_v9 = vadd.f32 %v2245_v29, %v3398_v12  ;;  %v2247_v51 = vpop.f32.mrb[21].mxu0  ;;  %v2290_v52 = vpop.f32.mrb[29].mxu1  ;;  %v2299_v39 = vadd.f32 %v2288_v26, %v3408_v21 }
 0x737   :  { %v2298_v37 = vadd.f32 %v2247_v51, %v3467_v32  ;;  %v2249_v53 = vpop.f32.mrb[22].mxu0  ;;  %v2292_v54 = vpop.f32.mrb[30].mxu1  ;;  %v2300_v32 = vadd.f32 %v2290_v52, %v3410_v23 }
 0x738   :  { %v2305_v55 = vmul.f32 0.5, %v2297_v9  ;;  %v2301_v16 = vadd.f32 %v2249_v53, %v3400_v13  ;;  %v2251_v56 = vpop.f32.mrb[23].mxu0  ;;  %v2294_v57 = vpop.f32.mrb[31].mxu1  ;;  %v2303_v61 = vadd.f32 %v2292_v54, %v3413_v25 }
 0x739   :  { %v2313_v58 = vmul.f32 0.5, %v2298_v37  ;;  %v2302_v59 = vadd.f32 %v2251_v56, %v3471_v15  ;;  %v2323_v13 = vmul.f32 0.5, %v2300_v32  ;;  %v2304_v62 = vadd.f32 %v2294_v57, %v3415_v27 }
 0x73a   :  { %3102 = vtanh.f32 %v2305_v55  ;;  %v2306_v60 = vmul.f32 0.5, %v2301_v16 }
 0x73b   :  { %3104 = vtanh.f32 %v2313_v58  ;;  %v2314_v12 = vmul.f32 0.5, %v2302_v59  ;;  %v2324_v21 = vmul.f32 0.5, %v2304_v62 }
 0x73c   :  { %3106 = vtanh.f32 %v2306_v60 }
 0x73d   :  { %3108 = vtanh.f32 %v2299_v39 }
 0x73e   :  { %3110 = vtanh.f32 %v2314_v12 }
 0x73f   :  { %3112 = vtanh.f32 %v2303_v61 }
 0x740   :  { %3114 = vtanh.f32 %v2323_v13 }
 0x741   :  { %3116 = vtanh.f32 %v2324_v21 }
 0x744   :  { %v3103_v63 = vpop.eup %3102 }
 0x745   :  { %v3105_v1 = vpop.eup %3104  ;;  %v2309_v15 = vmul.f32 0.5, %v3103_v63 }
 0x746   :  { %v2317_v2 = vmul.f32 0.5, %v3105_v1  ;;  %v3107_v5 = vpop.eup %3106 }
 0x747   :  { %v2311_v34 = vadd.f32 0.5, %v2309_v15  ;;  %v3109_v30 = vpop.eup %3108  ;;  %v2310_v6 = vmul.f32 0.5, %v3107_v5 }
 0x748   :  { %v2319_v11 = vadd.f32 0.5, %v2317_v2  ;;  %v3111_v25 = vpop.eup %3110 }
 0x749   :  { %v2333_v10 = vmul.f32 %v3109_v30, %v2311_v34  ;;  %v2312_v36 = vadd.f32 0.5, %v2310_v6  ;;  %v2318_v18 = vmul.f32 0.5, %v3111_v25  ;;  %v3113_v3 = vpop.eup %3112 }
 0x74a   :  { %v2331_v23 = vmul.f32 %v2319_v11, %v3760_v4  ;;  %v3115_v7 = vpop.eup %3114 }
 0x74b   :  { %v2320_v38 = vadd.f32 0.5, %v2318_v18  ;;  %v2334_v35 = vmul.f32 %v3113_v3, %v2312_v36  ;;  %v2327_v0 = vmul.f32 0.5, %v3115_v7  ;;  %v3117_v4 = vpop.eup %3116 }
 0x74c   :  { %v2335_v27 = vadd.f32 %v2333_v10, %v2331_v23  ;;  %v2328_v24 = vmul.f32 0.5, %v3117_v4 }
 0x74d   :  { %v2332_v14 = vmul.f32 %v2320_v38, %v3764_v28  ;;  %v2329_v31 = vadd.f32 0.5, %v2327_v0 }
 0x74e   :  { %3118 = vtanh.f32 %v2335_v27  ;;  %v2330_v44 = vadd.f32 0.5, %v2328_v24 }
 0x74f   :  { %v2336_v19 = vadd.f32 %v2334_v35, %v2332_v14 }
 0x751   :  { %3120 = vtanh.f32 %v2336_v19 }
 0x755   :  { %v2455_v20 = vpop.f32.mrb[24].mxu0 }
 0x756   :  { %v2456_v22 = vadd.f32 %v3806_v8, %v2455_v20  ;;  %v2797_v33 = vpop.f32.mrb[25].mxu0 }
 0x757   :  { %v2458_v40 = vpop.f32.mrb[26].mxu0 }
 0x758   :  { %v3119_v41 = vpop.eup %3118  ;;  %2510 = vst [vmem:[%s3870_s6] sm:$0xff] %v2456_v22  ;;  %v2459_v28 = vadd.f32 %v3806_v8, %v2458_v40  ;;  %v2798_v42 = vpop.f32.mrb[27].mxu0 }
 0x759   :  { %v2339_v43 = vmul.f32 %v3119_v41, %v2329_v31 }
 0x75a   :  { %2511 = vst [vmem:[%s3870_s6 + $0x38] sm:$0xff] %v2459_v28 }
 0x75b   :  { %v3121_v17 = vpop.eup %3120 }
 0x75c   :  { %v2340_v46 = vmul.f32 %v3121_v17, %v2330_v44 }
 0x75d   :  { %v2463_v45 = vpop.f32.mrb[28].mxu0 }
 0x75e   :  { %v2464_v47 = vadd.f32 %v3806_v8, %v2463_v45  ;;  %v2801_v48 = vpop.f32.mrb[29].mxu0  ;;  %v2341_v50 = vpack.c.bf16 %v2340_v46, %v2339_v43 }
 0x75f   :  { %v2466_v49 = vpop.f32.mrb[30].mxu0 }
 0x760   :  { %2512 = vst [vmem:[%s3870_s6 + $0x8] sm:$0xff] %v2464_v47  ;;  %v2467_v29 = vadd.f32 %v3806_v8, %v2466_v49  ;;  %v2802_v26 = vpop.f32.mrb[31].mxu0  ;;  %2820 = vmatmul.mubr.bf16.gmra.mrb[48].mxu0 %v2341_v50 }
 0x762   :  { %2513 = vst [vmem:[%s3870_s6 + $0x40] sm:$0xff] %v2467_v29 }
 0x765   :  { %v2471_v9 = vpop.f32.mrb[32].mxu0 }
 0x766   :  { %v2472_v51 = vadd.f32 %v3806_v8, %v2471_v9  ;;  %v2805_v52 = vpop.f32.mrb[33].mxu0 }
 0x767   :  { %v2474_v37 = vpop.f32.mrb[34].mxu0 }
 0x768   :  { %2514 = vst [vmem:[%s3870_s6 + $0x10] sm:$0xff] %v2472_v51  ;;  %v2475_v53 = vadd.f32 %v3806_v8, %v2474_v37  ;;  %v2806_v54 = vpop.f32.mrb[35].mxu0 }
 0x76a   :  { %2515 = vst [vmem:[%s3870_s6 + $0x48] sm:$0xff] %v2475_v53 }
 0x76d   :  { %v2479_v55 = vpop.f32.mrb[36].mxu0 }
 0x76e   :  { %v2480_v16 = vadd.f32 %v3806_v8, %v2479_v55  ;;  %v2809_v56 = vpop.f32.mrb[37].mxu0 }
 0x76f   :  { %v2482_v57 = vpop.f32.mrb[38].mxu0 }
 0x770   :  { %2516 = vst [vmem:[%s3870_s6 + $0x18] sm:$0xff] %v2480_v16  ;;  %v2483_v58 = vadd.f32 %v3806_v8, %v2482_v57  ;;  %v2810_v59 = vpop.f32.mrb[39].mxu0 }
 0x772   :  { %2517 = vst [vmem:[%s3870_s6 + $0x50] sm:$0xff] %v2483_v58 }
 0x775   :  { %v2487_v39 = vpop.f32.mrb[40].mxu0 }
 0x776   :  { %v2488_v60 = vadd.f32 %v3806_v8, %v2487_v39  ;;  %v2813_v12 = vpop.f32.mrb[41].mxu0 }
 0x777   :  { %v2490_v61 = vpop.f32.mrb[42].mxu0 }
 0x778   :  { %2518 = vst [vmem:[%s3870_s6 + $0x20] sm:$0xff] %v2488_v60  ;;  %v2491_v32 = vadd.f32 %v3806_v8, %v2490_v61  ;;  %v2814_v13 = vpop.f32.mrb[43].mxu0 }
 0x77a   :  { %2519 = vst [vmem:[%s3870_s6 + $0x58] sm:$0xff] %v2491_v32 }
 0x77d   :  { %v2495_v62 = vpop.f32.mrb[44].mxu0 }
 0x77e   :  { %v2496_v63 = vadd.f32 %v3806_v8, %v2495_v62  ;;  %v2817_v1 = vpop.f32.mrb[45].mxu0 }
 0x77f   :  { %v2498_v15 = vpop.f32.mrb[46].mxu0 }
 0x780   :  { %2520 = vst [vmem:[%s3870_s6 + $0x28] sm:$0xff] %v2496_v63  ;;  %v2499_v2 = vadd.f32 %v3806_v8, %v2498_v15  ;;  %v2818_v21 = vpop.f32.mrb[47].mxu0 }
 0x782   :  { %2521 = vst [vmem:[%s3870_s6 + $0x60] sm:$0xff] %v2499_v2 }
 0x833   :  { %v2503_v5 = vpop.f32.mrb[48].mxu0 }
 0x834   :  { %v2504_v34 = vadd.f32 %v3806_v8, %v2503_v5  ;;  %v2821_v30 = vpop.f32.mrb[49].mxu0 }
 0x835   :  { %v2506_v11 = vpop.f32.mrb[50].mxu0 }
 0x836   :  { %2522 = vst [vmem:[%s3870_s6 + $0x30] sm:$0xff] %v2504_v34  ;;  %v2507_v6 = vadd.f32 %v3806_v8, %v2506_v11  ;;  %v2822_v25 = vpop.f32.mrb[51].mxu0 }
 0x838   :  { %2523 = vst [vmem:[%s3870_s6 + $0x68] sm:$0xff] %v2507_v6 }
 0x839   :  { %2528 = vsyncpa [#allocation4], 1 }
 0x83a   :  { %2529 = vsyncpa [#allocation6], 1 }

</bundles_post_ra>
